<compile_context>
chip_gen: v6e
topology: v6e:2x2x1
jax: 0.10.0
libtpu: 0.0.40
codegen_flags: <defaults>
</compile_context>

<pallas_src>
import functools

import jax
import jax.numpy as jnp
from jax.experimental import pallas as pl
from jax.experimental.pallas import tpu as pltpu


# ----------------------------------------------------------------------------
# Coefficient precomputation (tiny, O(H), done once per call in plain JAX).
# ----------------------------------------------------------------------------
def _curl_coefficients(W1, W2, nu):
    """Per-hidden-unit coefficient matrices (3, H) for u/v/w, advection terms,
    d(omega)/dt and nu*laplacian(omega)."""
    w1x, w1y, w1z, w1t = W1[0], W1[1], W1[2], W1[3]

    # u = dpsi2/dy - dpsi1/dz, v = dpsi0/dz - dpsi2/dx, w = dpsi1/dx - dpsi0/dy
    a_u = W2[:, 2] * w1y - W2[:, 1] * w1z
    a_v = W2[:, 0] * w1z - W2[:, 2] * w1x
    a_w = W2[:, 1] * w1x - W2[:, 0] * w1y

    # omega_i = dw/dz - dv/dy, omega_j = du/dz - dw/dx, omega_k = dv/dx - du/dy
    g_i = a_w * w1z - a_v * w1y
    g_j = a_u * w1z - a_w * w1x
    g_k = a_v * w1x - a_u * w1y

    # lapw = d2(omega_i)/dx2 + d2(omega_j)/dy2 + d2(omega_k)/dz2
    delta = g_i * w1x ** 2 + g_j * w1y ** 2 + g_k * w1z ** 2

    C1 = jnp.stack([a_u, a_v, a_w]).astype(jnp.float32)                   # vs tanh'   -> u, v, w
    C2 = jnp.stack([a_u * w1x, a_v * w1y, a_w * w1z]).astype(jnp.float32)  # vs tanh''  -> du/dx, dv/dy, dw/dz
    C3 = jnp.stack([g_i * w1t, g_j * w1t, g_k * w1t]).astype(jnp.float32)  # vs tanh''' -> d(omega)/dt
    lap = (nu * delta).astype(jnp.float32)                                 # nu folded in here
    C4 = jnp.stack([lap, lap, lap])                                        # vs tanh''''-> nu*lapw (replicated)
    return C1, C2, C3, C4


# ----------------------------------------------------------------------------
# Pallas kernel: lane-dense, feature-major, one tile of points per grid step.
# ----------------------------------------------------------------------------
def _hydro_kernel(xT_ref, w1_ref, b1_ref, c1_ref, c2_ref, c3_ref, c4_ref,
                  f_ref, nse_ref):
    # z: (H, TN) = W1^T @ x_tile + b1 (lane-broadcast of the (H, 1) bias column).
    z = jnp.dot(w1_ref[...], xT_ref[...], preferred_element_type=jnp.float32)
    z = z + b1_ref[...]
    a = jnp.tanh(z)
    a2 = a * a
    s = 1.0 - a2                              # tanh'
    t2 = -2.0 * a * s                         # tanh''
    t3 = s * (6.0 * a2 - 2.0)                 # tanh'''
    t4 = 8.0 * a * s * (2.0 - 3.0 * a2)       # tanh''''

    g1 = jnp.dot(c1_ref[...], s, preferred_element_type=jnp.float32)   # (3, TN): u, v, w
    g2 = jnp.dot(c2_ref[...], t2, preferred_element_type=jnp.float32)  # du/dx, dv/dy, dw/dz
    g3 = jnp.dot(c3_ref[...], t3, preferred_element_type=jnp.float32)  # d(omega_{i,j,k})/dt
    g4 = jnp.dot(c4_ref[...], t4, preferred_element_type=jnp.float32)  # nu*lapw (replicated)

    f_ref[...] = g1
    # NSE_c = d(omega_c)/dt + vel_c * dvel_c/dx_c - nu * lapw
    nse_ref[...] = g3 + g1 * g2 - g4


# ----------------------------------------------------------------------------
# Wrapper: HydroNetwork.forward semantics  ->  (f, NSE), both (N, 3).
# ----------------------------------------------------------------------------
@functools.partial(jax.jit, static_argnames=("tile_n",))
def hydro_forward(x, W1, b1, W2, b2, nu, tile_n=4096):
    N, din = x.shape
    H = W1.shape[1]
    n_pad = ((N + tile_n - 1) // tile_n) * tile_n

    # Feature-major input slab (4, n_pad): rows = (x, y, z, t); pad cols are zero.
    xT = jnp.zeros((din, n_pad), jnp.float32).at[:, :N].set(x.T.astype(jnp.float32))
    w1 = W1.T.astype(jnp.float32)                       # (H, 4)
    b1c = b1.astype(jnp.float32).reshape(H, 1)          # (H, 1) lane-broadcast column
    nu32 = jnp.asarray(nu, jnp.float32)
    C1, C2, C3, C4 = _curl_coefficients(W1.astype(jnp.float32),
                                        W2.astype(jnp.float32), nu32)

    f3, nse3 = pl.pallas_call(
        _hydro_kernel,
        out_shape=(
            jax.ShapeDtypeStruct((3, n_pad), jnp.float32),
            jax.ShapeDtypeStruct((3, n_pad), jnp.float32),
        ),
        grid=(n_pad // tile_n,),
        in_specs=[
            pl.BlockSpec((din, tile_n), lambda i: (0, i)),  # x tile (lane-dense)
            pl.BlockSpec((H, din), lambda i: (0, 0)),       # W1^T
            pl.BlockSpec((H, 1), lambda i: (0, 0)),         # b1 column
            pl.BlockSpec((3, H), lambda i: (0, 0)),         # C1
            pl.BlockSpec((3, H), lambda i: (0, 0)),         # C2
            pl.BlockSpec((3, H), lambda i: (0, 0)),         # C3
            pl.BlockSpec((3, H), lambda i: (0, 0)),         # C4
        ],
        out_specs=(
            pl.BlockSpec((3, tile_n), lambda i: (0, i)),    # f slab
            pl.BlockSpec((3, tile_n), lambda i: (0, i)),    # NSE slab
        ),
        compiler_params=pltpu.CompilerParams(
            dimension_semantics=("parallel",)),             # no revisited outputs
    )(xT, w1, b1c, C1, C2, C3, C4)

    f = f3[:, :N].T      # (N, 3) = stack(u, v, w)
    NSE = nse3[:, :N].T  # (N, 3) = stack(NSE_i, NSE_j, NSE_k)
    return f, NSE


# ----------------------------------------------------------------------------
# Pure-JAX references for correctness.
# ----------------------------------------------------------------------------
def _analytic_reference(x, W1, b1, W2, b2, nu):
    """Same analytic derivatives, vectorized in plain XLA (checks kernel/layout)."""
    C1, C2, C3, C4 = _curl_coefficients(W1, W2, jnp.asarray(nu, jnp.float32))
    a = jnp.tanh(x @ W1 + b1)
    a2 = a * a
    s = 1.0 - a2
    t2 = -2.0 * a * s
    t3 = s * (6.0 * a2 - 2.0)
    t4 = 8.0 * a * s * (2.0 - 3.0 * a2)
    G1, G2, G3, G4 = s @ C1.T, t2 @ C2.T, t3 @ C3.T, t4 @ C4.T
    return G1, G3 + G1 * G2 - G4


def _autodiff_reference(x_pts, W1, b1, W2, b2, nu):
    """Literal translation of HydroNetwork.forward via nested forward-mode autodiff."""
    def psi(q):
        return jnp.tanh(q @ W1 + b1) @ W2 + b2                      # (3,)

    def uvw(q):
        J = jax.jacfwd(psi)(q)                                      # (3, 4) = dpsi[k, d]
        return jnp.stack([J[2, 1] - J[1, 2], J[0, 2] - J[2, 0], J[1, 0] - J[0, 1]])

    def omega(q):
        D = jax.jacfwd(uvw)(q)                                      # rows du, dv, dw
        return jnp.stack([D[2, 2] - D[1, 1], D[0, 2] - D[2, 0], D[1, 0] - D[0, 1]])

    def domega_diag(q):
        D = jax.jacfwd(omega)(q)
        return jnp.stack([D[0, 0], D[1, 1], D[2, 2]])

    def single(q):
        f = uvw(q)
        duvw = jax.jacfwd(uvw)(q)
        dom = jax.jacfwd(omega)(q)
        d2 = jax.jacfwd(domega_diag)(q)
        lapw = d2[0, 0] + d2[1, 1] + d2[2, 2]
        adv = jnp.stack([f[0] * duvw[0, 0], f[1] * duvw[1, 1], f[2] * duvw[2, 2]])
        nse = dom[:, 3] + adv - nu * lapw
        return f, nse

    return jax.vmap(single)(x_pts)


if __name__ == "__main__":
    key = jax.random.PRNGKey(0)
    N, DIN, H = 2048, 4, 64
    k_x, k1, k2, k3, k4 = jax.random.split(key, 5)

    # Collocation points (x, y, z, t) in the unit hypercube.
    x = jax.random.uniform(k_x, (N, DIN), dtype=jnp.float32)

    def glorot(k, shape):
        fan_in, fan_out = shape
        return jax.random.normal(k, shape, jnp.float32) * jnp.sqrt(2.0 / (fan_in + fan_out))

    # Synthesized streamnetwork parameters (deterministic).
    W1 = glorot(k1, (DIN, H))
    b1 = 0.1 * jax.random.normal(k2, (H,), jnp.float32)
    W2 = glorot(k3, (H, 3))
    b2 = 0.1 * jax.random.normal(k4, (3,), jnp.float32)
    nu = jnp.float32(1.0)            # nn.Parameter(torch.tensor(1.0))

    f, NSE = hydro_forward(x, W1, b1, W2, b2, nu, tile_n=512)
    jax.block_until_ready((f, NSE))
    assert f.shape == (N, 3) and NSE.shape == (N, 3)

    # Parity vs. vectorized pure-JAX implementation of the same analytic math.
    f_ref, nse_ref = _analytic_reference(x, W1, b1, W2, b2, nu)
    assert jnp.allclose(f, f_ref, atol=5e-4, rtol=5e-3)
    assert jnp.allclose(NSE, nse_ref, atol=5e-4, rtol=5e-3)

    # Semantics check vs. a literal autodiff translation of HydroNetwork.forward
    # (nested 4th-order jacfwd) on a subset of points.
    n_chk = 8
    f_ad, nse_ad = _autodiff_reference(x[:n_chk], W1, b1, W2, b2, nu)
    assert jnp.allclose(f[:n_chk], f_ad, atol=5e-4, rtol=5e-3)
    assert jnp.allclose(NSE[:n_chk], nse_ad, atol=5e-4, rtol=5e-3)

    print("KERNEL_OK")
</pallas_src>

<mosaic_0001>
module attributes {stable_mosaic.version = 11 : i64} {
  func.func @_hydro_kernel(%arg0: i32, %arg1: memref<4x512xf32, #tpu.memory_space<vmem>>, %arg2: memref<64x4xf32, #tpu.memory_space<vmem>>, %arg3: memref<64x1xf32, #tpu.memory_space<vmem>>, %arg4: memref<3x64xf32, #tpu.memory_space<vmem>>, %arg5: memref<3x64xf32, #tpu.memory_space<vmem>>, %arg6: memref<3x64xf32, #tpu.memory_space<vmem>>, %arg7: memref<3x64xf32, #tpu.memory_space<vmem>>, %arg8: memref<3x512xf32, #tpu.memory_space<vmem>>, %arg9: memref<3x512xf32, #tpu.memory_space<vmem>>) attributes {dimension_semantics = [#tpu.dimension_semantics<parallel>], iteration_bounds = array<i64: 4>, scalar_prefetch = 0 : i64, scratch_operands = 0 : i64, tpu.core_type = #tpu.core_type<tc>, window_params = [{transform_indices = @transform_0, window_bounds = array<i64: 4, 512>}, {pipeline_mode = #tpu.pipeline_mode<synchronous>, transform_indices = @transform_1, window_bounds = array<i64: 64, 4>}, {pipeline_mode = #tpu.pipeline_mode<synchronous>, transform_indices = @transform_2, window_bounds = array<i64: 64, 1>}, {pipeline_mode = #tpu.pipeline_mode<synchronous>, transform_indices = @transform_3, window_bounds = array<i64: 3, 64>}, {pipeline_mode = #tpu.pipeline_mode<synchronous>, transform_indices = @transform_4, window_bounds = array<i64: 3, 64>}, {pipeline_mode = #tpu.pipeline_mode<synchronous>, transform_indices = @transform_5, window_bounds = array<i64: 3, 64>}, {pipeline_mode = #tpu.pipeline_mode<synchronous>, transform_indices = @transform_6, window_bounds = array<i64: 3, 64>}, {transform_indices = @transform_7, window_bounds = array<i64: 3, 512>}, {transform_indices = @transform_8, window_bounds = array<i64: 3, 512>}]} {
    %c0 = arith.constant 0 : index
    %c0_0 = arith.constant 0 : index
    %0 = vector.load %arg2[%c0, %c0_0] : memref<64x4xf32, #tpu.memory_space<vmem>>, vector<64x4xf32>
    %c0_1 = arith.constant 0 : index
    %c0_2 = arith.constant 0 : index
    %1 = vector.load %arg1[%c0_1, %c0_2] : memref<4x512xf32, #tpu.memory_space<vmem>>, vector<4x512xf32>
    %cst = arith.constant dense<0.000000e+00> : vector<64x512xf32>
    %2 = tpu.matmul %0, %1, %cst {dimension_numbers = #tpu.dot_dimension_numbers<[1], [0], [0], [1], [0, 0, 1, 1], [], []>} : vector<64x4xf32>, vector<4x512xf32>, vector<64x512xf32> -> vector<64x512xf32>
    %c0_3 = arith.constant 0 : index
    %c0_4 = arith.constant 0 : index
    %3 = vector.load %arg3[%c0_3, %c0_4] : memref<64x1xf32, #tpu.memory_space<vmem>>, vector<64x1xf32>
    %4 = vector.broadcast %3 : vector<64x1xf32> to vector<64x512xf32>
    %5 = arith.addf %2, %4 : vector<64x512xf32>
    %6 = math.tanh %5 : vector<64x512xf32>
    %7 = arith.mulf %6, %6 : vector<64x512xf32>
    %cst_5 = arith.constant 1.000000e+00 : f32
    %8 = vector.broadcast %cst_5 : f32 to vector<64x512xf32>
    %9 = arith.subf %8, %7 : vector<64x512xf32>
    %cst_6 = arith.constant -2.000000e+00 : f32
    %10 = vector.broadcast %cst_6 : f32 to vector<64x512xf32>
    %11 = arith.mulf %10, %6 : vector<64x512xf32>
    %12 = arith.mulf %11, %9 : vector<64x512xf32>
    %cst_7 = arith.constant 6.000000e+00 : f32
    %13 = vector.broadcast %cst_7 : f32 to vector<64x512xf32>
    %14 = arith.mulf %13, %7 : vector<64x512xf32>
    %cst_8 = arith.constant 2.000000e+00 : f32
    %15 = vector.broadcast %cst_8 : f32 to vector<64x512xf32>
    %16 = arith.subf %14, %15 : vector<64x512xf32>
    %17 = arith.mulf %9, %16 : vector<64x512xf32>
    %cst_9 = arith.constant 8.000000e+00 : f32
    %18 = vector.broadcast %cst_9 : f32 to vector<64x512xf32>
    %19 = arith.mulf %18, %6 : vector<64x512xf32>
    %20 = arith.mulf %19, %9 : vector<64x512xf32>
    %cst_10 = arith.constant 3.000000e+00 : f32
    %21 = vector.broadcast %cst_10 : f32 to vector<64x512xf32>
    %22 = arith.mulf %21, %7 : vector<64x512xf32>
    %cst_11 = arith.constant 2.000000e+00 : f32
    %23 = vector.broadcast %cst_11 : f32 to vector<64x512xf32>
    %24 = arith.subf %23, %22 : vector<64x512xf32>
    %25 = arith.mulf %20, %24 : vector<64x512xf32>
    %c0_12 = arith.constant 0 : index
    %c0_13 = arith.constant 0 : index
    %26 = vector.load %arg4[%c0_12, %c0_13] : memref<3x64xf32, #tpu.memory_space<vmem>>, vector<3x64xf32>
    %cst_14 = arith.constant dense<0.000000e+00> : vector<3x512xf32>
    %27 = tpu.matmul %26, %9, %cst_14 {dimension_numbers = #tpu.dot_dimension_numbers<[1], [0], [0], [1], [0, 0, 1, 1], [], []>} : vector<3x64xf32>, vector<64x512xf32>, vector<3x512xf32> -> vector<3x512xf32>
    %c0_15 = arith.constant 0 : index
    %c0_16 = arith.constant 0 : index
    %28 = vector.load %arg5[%c0_15, %c0_16] : memref<3x64xf32, #tpu.memory_space<vmem>>, vector<3x64xf32>
    %cst_17 = arith.constant dense<0.000000e+00> : vector<3x512xf32>
    %29 = tpu.matmul %28, %12, %cst_17 {dimension_numbers = #tpu.dot_dimension_numbers<[1], [0], [0], [1], [0, 0, 1, 1], [], []>} : vector<3x64xf32>, vector<64x512xf32>, vector<3x512xf32> -> vector<3x512xf32>
    %c0_18 = arith.constant 0 : index
    %c0_19 = arith.constant 0 : index
    %30 = vector.load %arg6[%c0_18, %c0_19] : memref<3x64xf32, #tpu.memory_space<vmem>>, vector<3x64xf32>
    %cst_20 = arith.constant dense<0.000000e+00> : vector<3x512xf32>
    %31 = tpu.matmul %30, %17, %cst_20 {dimension_numbers = #tpu.dot_dimension_numbers<[1], [0], [0], [1], [0, 0, 1, 1], [], []>} : vector<3x64xf32>, vector<64x512xf32>, vector<3x512xf32> -> vector<3x512xf32>
    %c0_21 = arith.constant 0 : index
    %c0_22 = arith.constant 0 : index
    %32 = vector.load %arg7[%c0_21, %c0_22] : memref<3x64xf32, #tpu.memory_space<vmem>>, vector<3x64xf32>
    %cst_23 = arith.constant dense<0.000000e+00> : vector<3x512xf32>
    %33 = tpu.matmul %32, %25, %cst_23 {dimension_numbers = #tpu.dot_dimension_numbers<[1], [0], [0], [1], [0, 0, 1, 1], [], []>} : vector<3x64xf32>, vector<64x512xf32>, vector<3x512xf32> -> vector<3x512xf32>
    %c0_24 = arith.constant 0 : index
    %c0_25 = arith.constant 0 : index
    %34 = vector.load %arg8[%c0_24, %c0_25] : memref<3x512xf32, #tpu.memory_space<vmem>>, vector<3x512xf32>
    tpu.vector_store %arg8[%c0_24, %c0_25], %27 {strides = array<i32>} : memref<3x512xf32, #tpu.memory_space<vmem>>, vector<3x512xf32>,
    %35 = arith.mulf %27, %29 : vector<3x512xf32>
    %36 = arith.addf %31, %35 : vector<3x512xf32>
    %37 = arith.subf %36, %33 : vector<3x512xf32>
    %c0_26 = arith.constant 0 : index
    %c0_27 = arith.constant 0 : index
    %38 = vector.load %arg9[%c0_26, %c0_27] : memref<3x512xf32, #tpu.memory_space<vmem>>, vector<3x512xf32>
    tpu.vector_store %arg9[%c0_26, %c0_27], %37 {strides = array<i32>} : memref<3x512xf32, #tpu.memory_space<vmem>>, vector<3x512xf32>,
    return
  }
  func.func @transform_0(%arg0: i32) -> (i32, i32) {
    %c0_i32 = arith.constant 0 : i32
    %c0_i32_0 = arith.constant 0 : i32
    return %c0_i32, %arg0 : i32, i32
  }
  func.func @transform_1(%arg0: i32) -> (i32, i32) {
    %c0_i32 = arith.constant 0 : i32
    %c0_i32_0 = arith.constant 0 : i32
    %c0_i32_1 = arith.constant 0 : i32
    return %c0_i32, %c0_i32_0 : i32, i32
  }
  func.func @transform_2(%arg0: i32) -> (i32, i32) {
    %c0_i32 = arith.constant 0 : i32
    %c0_i32_0 = arith.constant 0 : i32
    %c0_i32_1 = arith.constant 0 : i32
    return %c0_i32, %c0_i32_0 : i32, i32
  }
  func.func @transform_3(%arg0: i32) -> (i32, i32) {
    %c0_i32 = arith.constant 0 : i32
    %c0_i32_0 = arith.constant 0 : i32
    %c0_i32_1 = arith.constant 0 : i32
    return %c0_i32, %c0_i32_0 : i32, i32
  }
  func.func @transform_4(%arg0: i32) -> (i32, i32) {
    %c0_i32 = arith.constant 0 : i32
    %c0_i32_0 = arith.constant 0 : i32
    %c0_i32_1 = arith.constant 0 : i32
    return %c0_i32, %c0_i32_0 : i32, i32
  }
  func.func @transform_5(%arg0: i32) -> (i32, i32) {
    %c0_i32 = arith.constant 0 : i32
    %c0_i32_0 = arith.constant 0 : i32
    %c0_i32_1 = arith.constant 0 : i32
    return %c0_i32, %c0_i32_0 : i32, i32
  }
  func.func @transform_6(%arg0: i32) -> (i32, i32) {
    %c0_i32 = arith.constant 0 : i32
    %c0_i32_0 = arith.constant 0 : i32
    %c0_i32_1 = arith.constant 0 : i32
    return %c0_i32, %c0_i32_0 : i32, i32
  }
  func.func @transform_7(%arg0: i32) -> (i32, i32) {
    %c0_i32 = arith.constant 0 : i32
    %c0_i32_0 = arith.constant 0 : i32
    return %c0_i32, %arg0 : i32, i32
  }
  func.func @transform_8(%arg0: i32) -> (i32, i32) {
    %c0_i32 = arith.constant 0 : i32
    %c0_i32_0 = arith.constant 0 : i32
    return %c0_i32, %arg0 : i32, i32
  }
}

</mosaic_0001>

<bundles_post_ra>
// kernel: hydro_forward.1
= control target key start
LH: loop header
LB: loop body
LE: loop exit
PB: predicated region body
PF: predicated region fallthrough
CT: control target
= control target key end

     0   :  { %14 = vsyncpa [#allocation3], 0  ;;  %s3092_s0 = inlined_call_operand.vmem [shape: f32[4,2048], index: 0, kind: input, shape index: {}]   ;;  %s3093_s1 = inlined_call_operand.vmem [shape: f32[64,4], index: 1, kind: input, shape index: {}]   ;;  %s3094_s2 = inlined_call_operand.vmem [shape: f32[64,1], index: 2, kind: input, shape index: {}]   ;;  %s3095_s3 = inlined_call_operand.vmem [shape: f32[3,64], index: 3, kind: input, shape index: {}]   ;;  %s3096_s4 = inlined_call_operand.vmem [shape: f32[3,64], index: 4, kind: input, shape index: {}]   ;;  %s3097_s5 = inlined_call_operand.vmem [shape: f32[3,64], index: 5, kind: input, shape index: {}]   ;;  %s3098_s6 = inlined_call_operand.vmem [shape: f32[3,64], index: 6, kind: input, shape index: {}]   ;;  %s3099_s7 = inlined_call_operand.hbm [shape: f32[3,2048], index: 7, kind: output, shape index: {0}]   ;;  %s3100_s8 = inlined_call_operand.hbm [shape: f32[3,2048], index: 8, kind: output, shape index: {1}]  }
   0x1   :  { %16 = vsyncpa [#allocation3 + $0x1], 0 }
   0x2   :  { %17 = vsyncpa [#allocation5], 0 }
   0x3   :  { %19 = vsyncpa [#allocation5 + $0x1], 0  ;;  %s2128_s27 = smov 0   ;;  %s2130_s28 = smov 0  }
   0x4   :  { %s2132_s29 = smov 0   ;;  %s2134_s30 = smov 0  }
   0x5 LB: > { %s2149_s9 = sadd.s32 4294967295, %s2077_s30   ;;  %s1795_s10 = sadd.s32 4294967294, %s2077_s30   ;;  %s2077_s30 = sphi %s2134_s30, %s3425_s30   ;;  %s2073_s29 = sphi %s2132_s29, %s3424_s29   ;;  %s2069_s28 = sphi %s2130_s28, %s3423_s28   ;;  %s2065_s27 = sphi %s2128_s27, %s3422_s27  }
   0x6   : > { %s2153_s11 = sadd.s32 1, %s2077_s30   ;;  %s184_s12 = sadd.s32 1, %s2073_s29 }
   0x7   : > { %s181_s13 = ssub.s32 %s2077_s30, %s2153_s11  ;;  %p194_p0 = scmp.ne.s32.totalorder %s2073_s29, %s2069_s28 }
   0x8   : > { %p182_p1 = scmp.eq.s32.totalorder %s181_s13, 0  ;;  %p195_p2 = scmp.eq.s32.totalorder %s2149_s9, 3 }
   0x9   : > { %p200_p3 = scmp.ne.s32.totalorder %s2069_s28, %s2065_s27  ;;  %p201_p4 = scmp.eq.s32.totalorder %s1795_s10, 3 }
   0xa   : > { %s2164_s14 = scalar_select %p182_p1, %s2073_s29, %s184_s12  }
   0xb   : > { %p2166_p5 = por %p195_p2, %p194_p0  ;;  %p2170_p6 = por %p201_p4, %p200_p3 }
   0xc   : > { %p1798_p7 = scmp.ge.s32.totalorder %s2077_s30, 1  ;;  %p272_p8 = scmp.lt.s32.totalorder %s2077_s30, 5 }
   0xe   : > { %p273_p9 = pnand %p1798_p7, %p272_p8 }
  0x10   : > { %276 = sbr.rel (%p273_p9) target bundleno = 576 (0x240), region = 48 }
  0x15   : > { %s1801_s17 = sshll.u32 %s2149_s9, 2  ;;  %v3101_v0 = vmov 0.0   ;;  %v2080_v1 = vmov 0   ;;  %v334_v2 = vld [vmem:[%s3094_s2 + $0x28] sm:$0xff]  ;;  %v336_v3 = vld [vmem:[%s3094_s2 + $0x38] sm:$0xff]  ;;  %v333_v4 = vld [vmem:[%s3094_s2 + $0x20] sm:$0xff] }
  0x16   : > { %p312_p10 = scmp.lt.s32.totalorder %s1801_s17, 15  ;;  %479 = vmatprep.mubr.f32.mxu0 %v3101_v0  ;;  %592 = vmatprep.mubr.f32.mxu1 %v3101_v0  ;;  %v335_v5 = vld [vmem:[%s3094_s2 + $0x30] sm:$0xff]  ;;  %vm406_vm0 = vcmask 1043456   ;;  %v319_v10 = vld [vmem:[%s3093_s1] sm:$0xff]  ;;  %vm381_vm1 = vcmask 31744   ;;  %v332_v12 = vld [vmem:[%s3094_s2 + $0x18] sm:$0xff] }
  0x17   : > { %1920 = vset.pattern.permute.xlu1 %v2080_v1  ;;  %1919 = vset.pattern.permute.xlu0 %v2080_v1  ;;  %v331_v11 = vld [vmem:[%s3094_s2 + $0x10] sm:$0xff]  ;;  %v320_v13 = vld [vmem:[%s3093_s1 + $0x8] sm:$0xff]  ;;  %v329_v14 = vld [vmem:[%s3094_s2] sm:$0xff]  ;;  %vm1058_vm2 = vcmask 523264   ;;  %s3019_s23 = sand.u32 1, %s2069_s28   ;;  %s3213_s25 = sshll.u32 %s2149_s9, 8 }
  0x18   : > { %s3427_s17 = smov (!%p312_p10, %s1801_s17), 15  ;;  %364 = vperm.xlu1 %1920, %v334_v2   ;;  %374 = vperm.xlu0 %1919, %v336_v3   ;;  %v330_v15 = vld [vmem:[%s3094_s2 + $0x8] sm:$0xff]  ;;  %v321_v16 = vld [vmem:[%s3093_s1 + $0x10] sm:$0xff]  ;;  %v322_v17 = vld [vmem:[%s3093_s1 + $0x18] sm:$0xff]  ;;  %s3214_s24 = sshll.u32 %s3019_s23, 4 }
  0x19   : > { %s1802_s22 = sshll.u32 %s3427_s17, 2  ;;  %v323_v18 = vld [vmem:[%s3093_s1 + $0x20] sm:$0xff]  ;;  %v324_v19 = vld [vmem:[%s3093_s1 + $0x28] sm:$0xff]  ;;  %v325_v20 = vld [vmem:[%s3093_s1 + $0x30] sm:$0xff]  ;;  %s303_s26 = scalar_lea.vmem [#allocation2], %s3214_s24 }
  0x1a   : > { %s315_s13 = scalar_lea.vmem %s3092_s0, %s1802_s22  ;;  %v326_v21 = vld [vmem:[%s3093_s1 + $0x38] sm:$0xff]  ;;  %s1690_s10 = sshll.u32 %s303_s26, 4  ;;  %s1691_s10 = int_to_ptr.vmem [resolvable:$true] %s1690_s10 }
  0x1b   : > { %v327_v6 = vld [vmem:[%s315_s13] sm:$0xff]  ;;  %v328_v7 = vld [vmem:[%s315_s13 + $0x8] sm:$0xff]  ;;  %s3030_s17 = scalar_lea.hbm %s3099_s7, %s3213_s25  ;;  %s1671_s18 = scalar_lea.sflag [#allocation3], %s3019_s23 }
  0x1c   : > { %v379_v8 = vcombine.high %v327_v6, %v327_v6  ;;  %v380_v9 = vcombine.high %v328_v7, %v328_v7  ;;  %359 = vperm.xlu1 %1920, %v333_v4   ;;  %369 = vperm.xlu0 %1919, %v335_v5   ;;  %s1987_s19 = scalar_lea.vmem %s1691_s10, 256  ;;  %s2081_s20 = smov [#allocation2]  }
  0x1d   : > { %p1988_p11 = scmp.ne.s32.totalorder %s1691_s10, %s1987_s19  ;;  %s1991_s21 = sshll.u32 %s2081_s20, 4  ;;  %s1992_s21 = int_to_ptr.vmem [resolvable:$false] %s1991_s21 }
  0x1e   : > { %1803 = vmatprep.subr.msk.mxu0 %vm406_vm0, %v379_v8  ;;  %1813 = vmatprep.subr.msk.mxu1 %vm406_vm0, %v380_v9  ;;  %s1993_s22 = scalar_lea.vmem %s1992_s21, 512  ;;  %p1994_p0 = scmp.lt.s32.totalorder %s1691_s10, %s1992_s21 }
  0x1f   : > { %1804 = vmatpush1.msk.msra.mxu0 %vm406_vm0, %v327_v6  ;;  %1814 = vmatpush1.msk.msra.mxu1 %vm406_vm0, %v328_v7  ;;  %p1989_p12 = pnand %p1988_p11, %p2166_p5  ;;  %p1995_p1 = scmp.lt.s32.totalorder %s1993_s22, %s1987_s19 }
  0x20   : > { %1805 = vmatmul.mubr.msk.f32.vlgmr.msra.gmra.mxu0 %vm381_vm1, %v319_v10  ;;  %1815 = vmatmul.mubr.msk.f32.vlgmr.msra.gmra.mxu1 %vm381_vm1, %v319_v10 }
  0x21   : > { %485 = vmatprep.mubr.f32.mxu0 %v3101_v0  ;;  %598 = vmatprep.mubr.f32.mxu1 %v3101_v0  ;;  %p1990_p13 = pneg %p1989_p12  ;;  %p1996_p2 = por %p1995_p1, %p1994_p0 }
  0x22   : > { %349 = vperm.xlu1 %1920, %v331_v11   ;;  %354 = vperm.xlu0 %1919, %v332_v12  }
  0x23   : > { %p1997_p3 = pnand %p1996_p2, %p1990_p13 }
  0x24   : > { %1806 = vmatmul.mubr.msk.f32.gmra.mxu0 %vm381_vm1, %v320_v13  ;;  %1816 = vmatmul.mubr.msk.f32.gmra.mxu1 %vm381_vm1, %v320_v13 }
  0x25   : > { %491 = vmatprep.mubr.f32.mxu0 %v3101_v0  ;;  %604 = vmatprep.mubr.f32.mxu1 %v3101_v0 }
  0x26   : > { %339 = vperm.xlu1 %1920, %v329_v14   ;;  %344 = vperm.xlu0 %1919, %v330_v15  }
  0x28   : > { %1807 = vmatmul.mubr.msk.f32.gmra.mxu0 %vm381_vm1, %v321_v16  ;;  %1817 = vmatmul.mubr.msk.f32.gmra.mxu1 %vm381_vm1, %v321_v16 }
  0x29   : > { %497 = vmatprep.mubr.f32.mxu0 %v3101_v0  ;;  %610 = vmatprep.mubr.f32.mxu1 %v3101_v0 }
  0x2c   : > { %1808 = vmatmul.mubr.msk.f32.gmra.mxu0 %vm381_vm1, %v322_v17  ;;  %1818 = vmatmul.mubr.msk.f32.gmra.mxu1 %vm381_vm1, %v322_v17 }
  0x2d   : > { %503 = vmatprep.mubr.f32.mxu0 %v3101_v0  ;;  %616 = vmatprep.mubr.f32.mxu1 %v3101_v0 }
  0x30   : > { %1809 = vmatmul.mubr.msk.f32.gmra.mxu0 %vm381_vm1, %v323_v18  ;;  %1819 = vmatmul.mubr.msk.f32.gmra.mxu1 %vm381_vm1, %v323_v18 }
  0x31   : > { %509 = vmatprep.mubr.f32.mxu0 %v3101_v0  ;;  %622 = vmatprep.mubr.f32.mxu1 %v3101_v0 }
  0x34   : > { %1810 = vmatmul.mubr.msk.f32.gmra.mxu0 %vm381_vm1, %v324_v19  ;;  %1820 = vmatmul.mubr.msk.f32.gmra.mxu1 %vm381_vm1, %v324_v19 }
  0x35   : > { %515 = vmatprep.mubr.f32.mxu0 %v3101_v0  ;;  %628 = vmatprep.mubr.f32.mxu1 %v3101_v0 }
  0x38   : > { %1811 = vmatmul.mubr.msk.f32.gmra.mxu0 %vm381_vm1, %v325_v20  ;;  %1821 = vmatmul.mubr.msk.f32.gmra.mxu1 %vm381_vm1, %v325_v20 }
  0x39   : > { %521 = vmatprep.mubr.f32.mxu0 %v3101_v0  ;;  %634 = vmatprep.mubr.f32.mxu1 %v3101_v0 }
  0x3c   : > { %1812 = vmatmul.mubr.msk.f32.gmra.mxu0 %vm381_vm1, %v326_v21  ;;  %1822 = vmatmul.mubr.msk.f32.gmra.mxu1 %vm381_vm1, %v326_v21 }
  0x3d   : > { %1126 = vmatprep.mubr.f32.mxu0 %v3101_v0  ;;  %1197 = vmatprep.mubr.f32.mxu1 %v3101_v0 }
  0x93   : > { %v2262_v22 = vpop.permute.xlu1 %364  ;;  %v2264_v23 = vpop.permute.xlu0 %374 }
  0x97   : > { %v2266_v24 = vpop.permute.xlu1 %359  ;;  %v2268_v25 = vpop.permute.xlu0 %369 }
  0x9d   : > { %v350_v26 = vpop.permute.xlu1 %349  ;;  %v355_v27 = vpop.permute.xlu0 %354 }
  0xa1   : > { %v340_v28 = vpop.permute.xlu1 %339  ;;  %v345_v33 = vpop.permute.xlu0 %344 }
  0xe0   : > { %v481_v29 = vpop.f32.mrf.mxu0  ;;  %v594_v30 = vpop.f32.mrf.mxu1 }
  0xe1   : > { %v482_v31 = vadd.f32 %v481_v29, %v340_v28  ;;  %v595_v32 = vadd.f32 %v594_v30, %v340_v28 }
  0xe2   : > { %v483_v34 = vpop.f32.mrf.mxu0  ;;  %v596_v35 = vpop.f32.mrf.mxu1 }
  0xe3   : > { %1923 = vtanh.f32 %v482_v31  ;;  %v484_v36 = vadd.f32 %v483_v34, %v340_v28  ;;  %v597_v37 = vadd.f32 %v596_v35, %v340_v28 }
  0xe4   : > { %1925 = vtanh.f32 %v595_v32  ;;  %v487_v38 = vpop.f32.mrf.mxu0  ;;  %v600_v39 = vpop.f32.mrf.mxu1 }
  0xe5   : > { %1927 = vtanh.f32 %v484_v36  ;;  %v488_v40 = vadd.f32 %v487_v38, %v345_v33  ;;  %v601_v41 = vadd.f32 %v600_v39, %v345_v33 }
  0xe6   : > { %1929 = vtanh.f32 %v597_v37  ;;  %v489_v42 = vpop.f32.mrf.mxu0  ;;  %v602_v43 = vpop.f32.mrf.mxu1 }
  0xe7   : > { %1931 = vtanh.f32 %v488_v40  ;;  %v490_v44 = vadd.f32 %v489_v42, %v345_v33  ;;  %v603_v45 = vadd.f32 %v602_v43, %v345_v33 }
  0xe8   : > { %1933 = vtanh.f32 %v601_v41  ;;  %v493_v46 = vpop.f32.mrf.mxu0  ;;  %v606_v47 = vpop.f32.mrf.mxu1 }
  0xe9   : > { %1935 = vtanh.f32 %v490_v44  ;;  %v494_v48 = vadd.f32 %v493_v46, %v350_v26  ;;  %v607_v49 = vadd.f32 %v606_v47, %v350_v26 }
  0xea   : > { %1937 = vtanh.f32 %v603_v45  ;;  %v495_v50 = vpop.f32.mrf.mxu0  ;;  %v608_v51 = vpop.f32.mrf.mxu1 }
  0xeb   : > { %1939 = vtanh.f32 %v494_v48  ;;  %v496_v52 = vadd.f32 %v495_v50, %v350_v26  ;;  %v609_v53 = vadd.f32 %v608_v51, %v350_v26 }
  0xec   : > { %1941 = vtanh.f32 %v607_v49  ;;  %v499_v54 = vpop.f32.mrf.mxu0  ;;  %v612_v55 = vpop.f32.mrf.mxu1 }
  0xed   : > { %1943 = vtanh.f32 %v496_v52  ;;  %v500_v56 = vadd.f32 %v499_v54, %v355_v27  ;;  %v613_v57 = vadd.f32 %v612_v55, %v355_v27 }
  0xee   : > { %1945 = vtanh.f32 %v609_v53  ;;  %v501_v58 = vpop.f32.mrf.mxu0  ;;  %v614_v59 = vpop.f32.mrf.mxu1 }
  0xef   : > { %1947 = vtanh.f32 %v500_v56  ;;  %v502_v60 = vadd.f32 %v501_v58, %v355_v27  ;;  %v615_v61 = vadd.f32 %v614_v59, %v355_v27 }
  0xf0   : > { %v2270_v62 = vpop.eup %1923  ;;  %1949 = vtanh.f32 %v613_v57  ;;  %v505_v63 = vpop.f32.mrf.mxu0 }
  0xf1   : > { %3217 = vst [vmem:[#allocation8_spill] sm:$0xff] %v2270_v62  ;;  %v618_v1 = vpop.f32.mrf.mxu1  ;;  %v2272_v2 = vpop.eup %1925  ;;  %1951 = vtanh.f32 %v502_v60  ;;  %v506_v3 = vadd.f32 %v505_v63, %v2266_v24  ;;  %v2278_v5 = vmul.f32 %v2270_v62, %v2270_v62  ;;  %v2287_v10 = vmul.f32 -2.0, %v2270_v62 }
  0xf2   : > { %3218 = vst [vmem:[#allocation9_spill] sm:$0xff] %v2272_v2  ;;  %v619_v4 = vadd.f32 %v618_v1, %v2266_v24  ;;  %v2280_v6 = vpop.eup %1927  ;;  %1953 = vtanh.f32 %v615_v61  ;;  %v507_v7 = vpop.f32.mrf.mxu0  ;;  %v2284_v9 = vmul.f32 %v2272_v2, %v2272_v2  ;;  %v2290_v11 = vmul.f32 -2.0, %v2272_v2 }
  0xf3   : > { %3219 = vst [vmem:[#allocation10_spill] sm:$0xff] %v2278_v5  ;;  %3220 = vst [vmem:[#allocation11_spill] sm:$0xff] %v2280_v6  ;;  %v620_v8 = vpop.f32.mrf.mxu1  ;;  %v2292_v12 = vpop.eup %1929  ;;  %1955 = vtanh.f32 %v506_v3  ;;  %v508_v13 = vadd.f32 %v507_v7, %v2266_v24  ;;  %v2298_v15 = vmul.f32 %v2280_v6, %v2280_v6  ;;  %v2307_v20 = vsub.f32 1.0, %v2278_v5 }
  0xf4   : > { %3221 = vst [vmem:[#allocation12_spill] sm:$0xff] %v2284_v9  ;;  %3222 = vst [vmem:[#allocation13_spill] sm:$0xff] %v2292_v12  ;;  %v621_v14 = vadd.f32 %v620_v8, %v2266_v24  ;;  %v2300_v16 = vpop.eup %1931  ;;  %1957 = vtanh.f32 %v619_v4  ;;  %v511_v17 = vpop.f32.mrf.mxu0  ;;  %v2304_v19 = vmul.f32 %v2292_v12, %v2292_v12  ;;  %v2310_v21 = vsub.f32 1.0, %v2284_v9 }
  0xf5   : > { %3223 = vst [vmem:[#allocation14_spill] sm:$0xff] %v2298_v15  ;;  %3224 = vst [vmem:[#allocation15_spill] sm:$0xff] %v2300_v16  ;;  %v624_v18 = vpop.f32.mrf.mxu1  ;;  %v2312_v24 = vpop.eup %1933  ;;  %1959 = vtanh.f32 %v508_v13  ;;  %v512_v26 = vadd.f32 %v511_v17, %v2262_v22  ;;  %v2318_v28 = vmul.f32 %v2300_v16, %v2300_v16  ;;  %v2327_v33 = vsub.f32 1.0, %v2298_v15 }
  0xf6   : > { %3225 = vst [vmem:[#allocation16_spill] sm:$0xff] %v2304_v19  ;;  %3226 = vst [vmem:[#allocation17_spill] sm:$0xff] %v2312_v24  ;;  %v625_v27 = vadd.f32 %v624_v18, %v2262_v22  ;;  %v2320_v29 = vpop.eup %1935  ;;  %1961 = vtanh.f32 %v621_v14  ;;  %v513_v30 = vpop.f32.mrf.mxu0  ;;  %v2324_v32 = vmul.f32 %v2312_v24, %v2312_v24  ;;  %v2330_v34 = vsub.f32 1.0, %v2304_v19 }
  0xf7   : > { %3227 = vst [vmem:[#allocation18_spill] sm:$0xff] %v2318_v28  ;;  %3228 = vst [vmem:[#allocation19_spill] sm:$0xff] %v2320_v29  ;;  %v626_v31 = vpop.f32.mrf.mxu1  ;;  %v2332_v35 = vpop.eup %1937  ;;  %1963 = vtanh.f32 %v512_v26  ;;  %v514_v36 = vadd.f32 %v513_v30, %v2262_v22  ;;  %v2338_v38 = vmul.f32 %v2320_v29, %v2320_v29  ;;  %v2347_v43 = vsub.f32 1.0, %v2318_v28 }
  0xf8   : > { %3229 = vst [vmem:[#allocation20_spill] sm:$0xff] %v2324_v32  ;;  %3230 = vst [vmem:[#allocation21_spill] sm:$0xff] %v2327_v33  ;;  %v627_v37 = vadd.f32 %v626_v31, %v2262_v22  ;;  %v2340_v39 = vpop.eup %1939  ;;  %1965 = vtanh.f32 %v625_v27  ;;  %v517_v40 = vpop.f32.mrf.mxu0  ;;  %v2344_v42 = vmul.f32 %v2332_v35, %v2332_v35  ;;  %v2350_v44 = vsub.f32 1.0, %v2324_v32 }
  0xf9   : > { %3231 = vst [vmem:[#allocation22_spill] sm:$0xff] %v2332_v35  ;;  %3232 = vst [vmem:[#allocation23_spill] sm:$0xff] %v2338_v38  ;;  %v630_v41 = vpop.f32.mrf.mxu1  ;;  %v2352_v22 = vpop.eup %1941  ;;  %1967 = vtanh.f32 %v514_v36  ;;  %v518_v45 = vadd.f32 %v517_v40, %v2268_v25  ;;  %v2358_v47 = vmul.f32 %v2340_v39, %v2340_v39  ;;  %v2367_v52 = vsub.f32 1.0, %v2338_v38 }
  0xfa   : > { %3233 = vst [vmem:[#allocation24_spill] sm:$0xff] %v2340_v39  ;;  %3234 = vst [vmem:[#allocation25_spill] sm:$0xff] %v2344_v42  ;;  %v631_v46 = vadd.f32 %v630_v41, %v2268_v25  ;;  %v2360_v48 = vpop.eup %1943  ;;  %1969 = vtanh.f32 %v627_v37  ;;  %v519_v49 = vpop.f32.mrf.mxu0  ;;  %v2364_v51 = vmul.f32 %v2352_v22, %v2352_v22  ;;  %v2370_v53 = vsub.f32 1.0, %v2344_v42 }
  0xfb   : > { %3235 = vst [vmem:[#allocation26_spill] sm:$0xff] %v2352_v22  ;;  %3236 = vst [vmem:[#allocation27_spill] sm:$0xff] %v2358_v47  ;;  %v632_v50 = vpop.f32.mrf.mxu1  ;;  %v2372_v54 = vpop.eup %1945  ;;  %1971 = vtanh.f32 %v518_v45  ;;  %v520_v55 = vadd.f32 %v519_v49, %v2268_v25  ;;  %v2378_v57 = vmul.f32 %v2360_v48, %v2360_v48  ;;  %v2387_v63 = vsub.f32 1.0, %v2358_v47 }
  0xfc   : > { %3237 = vst [vmem:[#allocation28_spill] sm:$0xff] %v2360_v48  ;;  %3238 = vst [vmem:[#allocation29_spill] sm:$0xff] %v2364_v51  ;;  %v633_v56 = vadd.f32 %v632_v50, %v2268_v25  ;;  %v2380_v58 = vpop.eup %1947  ;;  %1973 = vtanh.f32 %v631_v46  ;;  %v523_v59 = vpop.f32.mrf.mxu0  ;;  %v2384_v61 = vmul.f32 %v2372_v54, %v2372_v54  ;;  %v2390_v1 = vsub.f32 1.0, %v2364_v51 }
  0xfd   : > { %3239 = vst [vmem:[#allocation30_spill] sm:$0xff] %v2372_v54  ;;  %3240 = vst [vmem:[#allocation31_spill] sm:$0xff] %v2378_v57  ;;  %v636_v60 = vpop.f32.mrf.mxu1  ;;  %v2392_v25 = vpop.eup %1949  ;;  %1975 = vtanh.f32 %v520_v55  ;;  %v524_v3 = vadd.f32 %v523_v59, %v2264_v23  ;;  %v2398_v7 = vmul.f32 %v2380_v58, %v2380_v58  ;;  %v2407_v18 = vsub.f32 1.0, %v2378_v57 }
  0xfe   : > { %3241 = vst [vmem:[#allocation32_spill] sm:$0xff] %v2380_v58  ;;  %3242 = vst [vmem:[#allocation33_spill] sm:$0xff] %v2384_v61  ;;  %v637_v4 = vadd.f32 %v636_v60, %v2264_v23  ;;  %v2400_v8 = vpop.eup %1951  ;;  %1977 = vtanh.f32 %v633_v56  ;;  %v525_v13 = vpop.f32.mrf.mxu0  ;;  %v2404_v17 = vmul.f32 %v2392_v25, %v2392_v25  ;;  %v2410_v26 = vsub.f32 1.0, %v2384_v61 }
  0xff   : > { %3243 = vst [vmem:[#allocation34_spill] sm:$0xff] %v2387_v63  ;;  %3244 = vst [vmem:[#allocation35_spill] sm:$0xff] %v2392_v25  ;;  %v638_v14 = vpop.f32.mrf.mxu1  ;;  %v2412_v27 = vpop.eup %1953  ;;  %1979 = vtanh.f32 %v524_v3  ;;  %v526_v30 = vadd.f32 %v525_v13, %v2264_v23  ;;  %v2418_v36 = vmul.f32 %v2400_v8, %v2400_v8  ;;  %v2427_v41 = vsub.f32 1.0, %v2398_v7 }
 0x100   : > { %3245 = vst [vmem:[#allocation36_spill] sm:$0xff] %v2398_v7  ;;  %3246 = vst [vmem:[#allocation37_spill] sm:$0xff] %v2400_v8  ;;  %v639_v31 = vadd.f32 %v638_v14, %v2264_v23  ;;  %v2420_v37 = vpop.eup %1955  ;;  %1981 = vtanh.f32 %v637_v4  ;;  %v2424_v40 = vmul.f32 %v2412_v27, %v2412_v27  ;;  %v2430_v45 = vsub.f32 1.0, %v2404_v17 }
 0x101   : > { %3247 = vst [vmem:[#allocation38_spill] sm:$0xff] %v2404_v17  ;;  %3248 = vst [vmem:[#allocation39_spill] sm:$0xff] %v2410_v26  ;;  %v2432_v46 = vpop.eup %1957  ;;  %1983 = vtanh.f32 %v526_v30  ;;  %v2436_v23 = vmul.f32 %v2420_v37, %v2420_v37  ;;  %v2439_v49 = vsub.f32 1.0, %v2418_v36  ;;  %v753_v50 = vmul.f32 -2.0, %v2420_v37 }
 0x102   : > { %3249 = vst [vmem:[#allocation40_spill] sm:$0xff] %v2412_v27  ;;  %3250 = vst [vmem:[#allocation41_spill] sm:$0xff] %v2418_v36  ;;  %v2442_v55 = vpop.eup %1959  ;;  %1985 = vtanh.f32 %v639_v31  ;;  %v2446_v56 = vmul.f32 %v2432_v46, %v2432_v46  ;;  %v2449_v59 = vsub.f32 1.0, %v2424_v40  ;;  %v755_v60 = vmul.f32 -2.0, %v2432_v46 }
 0x103   : > { %3251 = vst [vmem:[#allocation42_spill] sm:$0xff] %v2420_v37  ;;  %3252 = vst [vmem:[#allocation43_spill] sm:$0xff] %v2424_v40  ;;  %v2452_v3 = vpop.eup %1961  ;;  %v2456_v4 = vmul.f32 %v2442_v55, %v2442_v55  ;;  %v2459_v13 = vsub.f32 1.0, %v2436_v23  ;;  %v754_v14 = vmul.f32 -2.0, %v2442_v55  ;;  %v2463_v30 = vmul.f32 -2.0, %v2400_v8 }
 0x104   : > { %3253 = vst [vmem:[#allocation44_spill] sm:$0xff] %v2427_v41  ;;  %3254 = vst [vmem:[#allocation45_spill] sm:$0xff] %v2430_v45  ;;  %v2465_v31 = vpop.eup %1963  ;;  %v2469_v0 = vmul.f32 %v2452_v3, %v2452_v3  ;;  %v2472_v9 = vsub.f32 1.0, %v2446_v56  ;;  %v756_v2 = vmul.f32 -2.0, %v2452_v3  ;;  %v2476_v5 = vmul.f32 -2.0, %v2412_v27 }
 0x105   : > { %3255 = vst [vmem:[#allocation46_spill] sm:$0xff] %v2432_v46  ;;  %3256 = vst [vmem:[#allocation47_spill] sm:$0xff] %v2436_v23  ;;  %v2478_v62 = vpop.eup %1965  ;;  %v2482_v19 = vmul.f32 %v2465_v31, %v2465_v31  ;;  %v2485_v15 = vsub.f32 1.0, %v2456_v4  ;;  %v757_v32 = vmul.f32 -2.0, %v2465_v31  ;;  %v2489_v28 = vmul.f32 %v753_v50, %v2459_v13 }
 0x106   : > { %3257 = vst [vmem:[#allocation48_spill] sm:$0xff] %v2442_v55  ;;  %3258 = vst [vmem:[#allocation49_spill] sm:$0xff] %v2446_v56  ;;  %v2491_v42 = vpop.eup %1967  ;;  %v2495_v38 = vmul.f32 %v2478_v62, %v2478_v62  ;;  %v2498_v51 = vsub.f32 1.0, %v2469_v0  ;;  %v759_v47 = vmul.f32 -2.0, %v2478_v62  ;;  %v2502_v61 = vmul.f32 %v755_v60, %v2472_v9 }
 0x107   : > { %3259 = vst [vmem:[#allocation50_spill] sm:$0xff] %v2452_v3  ;;  %3260 = vst [vmem:[#allocation51_spill] sm:$0xff] %v2456_v4  ;;  %v2504_v57 = vpop.eup %1969  ;;  %v2508_v50 = vmul.f32 %v2491_v42, %v2491_v42  ;;  %v2511_v17 = vsub.f32 1.0, %v2482_v19  ;;  %v758_v7 = vmul.f32 -2.0, %v2491_v42  ;;  %v2515_v40 = vmul.f32 %v754_v14, %v2485_v15 }
 0x108   : > { %3261 = vst [vmem:[#allocation52_spill] sm:$0xff] %v2459_v13  ;;  %3262 = vst [vmem:[#allocation53_spill] sm:$0xff] %v2465_v31  ;;  %v2517_v27 = vpop.eup %1971  ;;  %v2521_v60 = vmul.f32 %v2504_v57, %v2504_v57  ;;  %v2524_v36 = vsub.f32 1.0, %v2495_v38  ;;  %v760_v8 = vmul.f32 -2.0, %v2504_v57 }
 0x109   : > { %3263 = vst [vmem:[#allocation54_spill] sm:$0xff] %v2469_v0  ;;  %3264 = vst [vmem:[#allocation55_spill] sm:$0xff] %v2478_v62  ;;  %v2530_v56 = vpop.eup %1973  ;;  %v2534_v14 = vmul.f32 %v2517_v27, %v2517_v27  ;;  %v2537_v46 = vsub.f32 1.0, %v2508_v50  ;;  %v2541_v23 = vmul.f32 %v757_v32, %v2511_v17 }
 0x10a   : > { %3265 = vst [vmem:[#allocation56_spill] sm:$0xff] %v2482_v19  ;;  %3266 = vst [vmem:[#allocation57_spill] sm:$0xff] %v2489_v28  ;;  %v761_v28 = vmul.f32 -2.0, %v2517_v27  ;;  %v763_v37 = vmul.f32 -2.0, %v2530_v56  ;;  %v2554_v0 = vmul.f32 %v759_v47, %v2524_v36 }
 0x10b   : > { %3267 = vst [vmem:[#allocation58_spill] sm:$0xff] %v2491_v42  ;;  %3268 = vst [vmem:[#allocation59_spill] sm:$0xff] %v2495_v38  ;;  %v2567_v55 = vmul.f32 %v758_v7, %v2537_v46 }
 0x10c   : > { %3269 = vst [vmem:[#allocation60_spill] sm:$0xff] %v2498_v51  ;;  %3270 = vst [vmem:[#allocation61_spill] sm:$0xff] %v2502_v61  ;;  %v2528_v61 = vmul.f32 %v756_v2, %v2498_v51  ;;  %v2547_v2 = vmul.f32 %v2530_v56, %v2530_v56 }
 0x10d   : > { %3271 = vst [vmem:[#allocation62_spill] sm:$0xff] %v2504_v57  ;;  %3272 = vst [vmem:[#allocation63_spill] sm:$0xff] %v2508_v50 }
 0x10e   : > { %3273 = vst [vmem:[#allocation64_spill] sm:$0xff] %v2511_v17  ;;  %3274 = vst [vmem:[#allocation65_spill] sm:$0xff] %v2515_v40  ;;  %v2543_v40 = vpop.eup %1975 }
 0x10f   : > { %3275 = vst [vmem:[#allocation66_spill] sm:$0xff] %v2517_v27  ;;  %3276 = vst [vmem:[#allocation67_spill] sm:$0xff] %v2521_v60  ;;  %v2556_v3 = vpop.eup %1977  ;;  %v2560_v32 = vmul.f32 %v2543_v40, %v2543_v40  ;;  %v762_v4 = vmul.f32 -2.0, %v2543_v40 }
 0x110   : > { %3277 = vst [vmem:[#allocation68_spill] sm:$0xff] %v2524_v36  ;;  %3278 = vst [vmem:[#allocation69_spill] sm:$0xff] %v2528_v61  ;;  %v2550_v61 = vsub.f32 1.0, %v2521_v60  ;;  %v2569_v38 = vpop.eup %1979  ;;  %v2573_v47 = vmul.f32 %v2556_v3, %v2556_v3  ;;  %v764_v62 = vmul.f32 -2.0, %v2556_v3 }
 0x111   : > { %3279 = vst [vmem:[#allocation70_spill] sm:$0xff] %v2530_v56  ;;  %3280 = vst [vmem:[#allocation71_spill] sm:$0xff] %v2534_v14  ;;  %v2582_v31 = vpop.eup %1981  ;;  %v2586_v7 = vmul.f32 %v2569_v38, %v2569_v38  ;;  %v765_v60 = vmul.f32 -2.0, %v2569_v38 }
 0x112   : > { %3281 = vst [vmem:[#allocation72_spill] sm:$0xff] %v2537_v46  ;;  %3282 = vst [vmem:[#allocation73_spill] sm:$0xff] %v2541_v23  ;;  %v2563_v23 = vsub.f32 1.0, %v2534_v14  ;;  %v2580_v19 = vmul.f32 %v760_v8, %v2550_v61  ;;  %v1984_v50 = vpop.eup %1983  ;;  %v2597_v42 = vmul.f32 %v2582_v31, %v2582_v31  ;;  %v2600_v8 = vsub.f32 1.0, %v2573_v47 }
 0x113   : > { %3283 = vst [vmem:[#allocation74_spill] sm:$0xff] %v2543_v40  ;;  %3284 = vst [vmem:[#allocation75_spill] sm:$0xff] %v2547_v2  ;;  %v1986_v56 = vpop.eup %1985  ;;  %v2606_v14 = vmul.f32 %v1984_v50, %v1984_v50  ;;  %v2609_v27 = vsub.f32 1.0, %v2586_v7 }
 0x114   : > { %3285 = vst [vmem:[#allocation76_spill] sm:$0xff] %v2550_v61  ;;  %3286 = vst [vmem:[#allocation77_spill] sm:$0xff] %v2554_v0  ;;  %v2576_v0 = vsub.f32 1.0, %v2547_v2  ;;  %v2593_v57 = vmul.f32 %v761_v28, %v2563_v23  ;;  %v766_v28 = vmul.f32 -2.0, %v1984_v50  ;;  %v2620_v40 = vmul.f32 %v764_v62, %v2600_v8 }
 0x115   : > { %3287 = vst [vmem:[#allocation78_spill] sm:$0xff] %v2556_v3  ;;  %3288 = vst [vmem:[#allocation79_spill] sm:$0xff] %v2560_v32  ;;  %v2614_v3 = vmul.f32 %v1986_v56, %v1986_v56 }
 0x116   : > { %3289 = vst [vmem:[#allocation80_spill] sm:$0xff] %v2563_v23  ;;  %3290 = vst [vmem:[#allocation81_spill] sm:$0xff] %v2567_v55  ;;  %v2589_v55 = vsub.f32 1.0, %v2560_v32  ;;  %v2604_v2 = vmul.f32 %v763_v37, %v2576_v0  ;;  %v768_v32 = vmul.f32 -2.0, %v1986_v56  ;;  %v2623_v37 = vsub.f32 1.0, %v2606_v14 }
 0x117   : > { %3291 = vst [vmem:[#allocation82_spill] sm:$0xff] %v2573_v47  ;;  %3292 = vst [vmem:[#allocation83_spill] sm:$0xff] %v2576_v0  ;;  %v2617_v47 = vsub.f32 1.0, %v2597_v42 }
 0x118   : > { %3293 = vst [vmem:[#allocation84_spill] sm:$0xff] %v2580_v19  ;;  %3294 = vst [vmem:[#allocation85_spill] sm:$0xff] %v2582_v31  ;;  %v767_v19 = vmul.f32 -2.0, %v2582_v31  ;;  %v2630_v31 = vmul.f32 %v2463_v30, %v2439_v49  ;;  %1078 = vmatprep.subr.mxu0 %v2623_v37  ;;  %v746_v30 = vmul.f32 -2.0, %v2360_v48  ;;  %v743_v48 = vmul.f32 -2.0, %v2312_v24 }
 0x119   : > { %3295 = vst [vmem:[#allocation86_spill] sm:$0xff] %v2586_v7  ;;  %3296 = vst [vmem:[#allocation87_spill] sm:$0xff] %v2589_v55  ;;  %1079 = vmatpush1.msra.mxu0 %v2609_v27 }
 0x11a   : > { %3297 = vst [vmem:[#allocation88_spill] sm:$0xff] %v2593_v57  ;;  %3298 = vst [vmem:[#allocation89_spill] sm:$0xff] %v2597_v42  ;;  %v2612_v57 = vmul.f32 %v762_v4, %v2589_v55  ;;  %v2634_v4 = vmul.f32 %v2476_v5, %v2449_v59  ;;  %v2640_v62 = vmul.f32 %v767_v19, %v2617_v47  ;;  %v751_v42 = vmul.f32 -2.0, %v2392_v25 }
 0x11b   : > { %3299 = vst [vmem:[#allocation90_spill] sm:$0xff] %v2600_v8  ;;  %3300 = vst [vmem:[#allocation91_spill] sm:$0xff] %v2604_v2  ;;  %v2626_v2 = vmul.f32 %v765_v60, %v2609_v27  ;;  %v2646_v60 = vmul.f32 %v766_v28, %v2623_v37  ;;  %v748_v5 = vmul.f32 -2.0, %v2372_v54  ;;  %v747_v28 = vmul.f32 -2.0, %v2352_v22  ;;  %1080 = vmatprep.subr.mxu0 %v2589_v55 }
 0x11c   : > { %3301 = vst [vmem:[#allocation92_spill] sm:$0xff] %v2606_v14  ;;  %3302 = vst [vmem:[#allocation93_spill] sm:$0xff] %v2609_v27  ;;  %1081 = vmatpush1.msra.mxu0 %v2563_v23  ;;  %v744_v22 = vmul.f32 -2.0, %v2332_v35  ;;  %v992_v35 = vmul.f32 3.0, %v2614_v3 }
 0x11d   : > { %3303 = vst [vmem:[#allocation94_spill] sm:$0xff] %v2612_v57  ;;  %3304 = vst [vmem:[#allocation95_spill] sm:$0xff] %v2614_v3  ;;  %v2637_v57 = vsub.f32 1.0, %v2614_v3  ;;  %v2669_v54 = vmul.f32 %v748_v5, %v2410_v26  ;;  %1082 = vmatprep.subr.mxu0 %v2537_v46  ;;  %v738_v5 = vmul.f32 -2.0, %v2280_v6  ;;  %v926_v6 = vmul.f32 8.0, %v1984_v50 }
 0x11e   : > { %3305 = vst [vmem:[#allocation96_spill] sm:$0xff] %v2617_v47  ;;  %3306 = vst [vmem:[#allocation97_spill] sm:$0xff] %v2620_v40  ;;  %v749_v40 = vmul.f32 -2.0, %v2380_v58  ;;  %v2660_v58 = vmul.f32 %v751_v42, %v2430_v45  ;;  %v2678_v42 = vmul.f32 %v747_v28, %v2390_v1  ;;  %v2692_v28 = vmul.f32 %v2287_v10, %v2307_v20 }
 0x11f   : > { %3307 = vst [vmem:[#allocation98_spill] sm:$0xff] %v2623_v37  ;;  %3308 = vst [vmem:[#allocation99_spill] sm:$0xff] %v2634_v4  ;;  %v745_v4 = vmul.f32 -2.0, %v2340_v39  ;;  %1149 = vmatprep.subr.mxu1 %v2637_v57  ;;  %v2654_v19 = vmul.f32 %v768_v32, %v2637_v57  ;;  %v2666_v39 = vmul.f32 %v746_v30, %v2407_v18  ;;  %v741_v30 = vmul.f32 -2.0, %v2300_v16 }
 0x120   : > { %3309 = vst [vmem:[#allocation100_spill] sm:$0xff] %v2637_v57  ;;  %v2657_v25 = vmul.f32 %v749_v40, %v2427_v41  ;;  %1150 = vmatpush1.msra.mxu1 %v2617_v47  ;;  %v742_v40 = vmul.f32 -2.0, %v2320_v29  ;;  %v740_v29 = vmul.f32 -2.0, %v2292_v12  ;;  %3310 = vst [vmem:[#allocation101_spill] sm:$0xff] %v2692_v28  ;;  %1083 = vmatpush1.msra.mxu0 %v2511_v17  ;;  %v928_v50 = vmul.f32 8.0, %v1986_v56 }
 0x121   : > { %v2672_v32 = vmul.f32 %v745_v4, %v2387_v63  ;;  %1151 = vmatprep.subr.mxu1 %v2600_v8  ;;  %v2697_v24 = vmul.f32 %v744_v22, %v2370_v53  ;;  %v2700_v16 = vmul.f32 %v741_v30, %v2347_v43  ;;  %1084 = vmatprep.subr.mxu0 %v2485_v15  ;;  %v990_v30 = vmul.f32 3.0, %v2606_v14  ;;  %v3314_v28 = vld [vmem:[#allocation89_spill] sm:$0xff] }
 0x122   : > { %1152 = vmatpush1.msra.mxu1 %v2576_v0  ;;  %v2686_v4 = vmul.f32 %v742_v40, %v2367_v52  ;;  %v2703_v40 = vmul.f32 %v743_v48, %v2350_v44  ;;  %v2708_v10 = vmul.f32 %v738_v5, %v2327_v33  ;;  %v2711_v12 = vmul.f32 %v740_v29, %v2330_v34 }
 0x123   : > { %1153 = vmatprep.subr.mxu1 %v2550_v61  ;;  %v2715_v22 = vmul.f32 %v2290_v11, %v2310_v21  ;;  %1085 = vmatpush1.msra.mxu0 %v2459_v13  ;;  %v958_v48 = vmul.f32 %v926_v6, %v2623_v37  ;;  %v925_v5 = vmul.f32 8.0, %v2569_v38  ;;  %v1022_v29 = vsub.f32 2.0, %v990_v30  ;;  %v3315_v37 = vld [vmem:[#allocation74_spill] sm:$0xff] }
 0x124   : > { %1154 = vmatpush1.msra.mxu1 %v2524_v36  ;;  %3311 = vst [vmem:[#allocation102_spill] sm:$0xff] %v2711_v12  ;;  %1086 = vmatprep.subr.mxu0 %v2439_v49  ;;  %v989_v11 = vmul.f32 3.0, %v2586_v7  ;;  %v991_v12 = vmul.f32 3.0, %v3314_v28  ;;  %v960_v6 = vmul.f32 %v928_v50, %v2637_v57  ;;  %v1024_v56 = vsub.f32 2.0, %v992_v35 }
 0x125   : > { %3312 = vst [vmem:[#allocation103_spill] sm:$0xff] %v2715_v22  ;;  %1155 = vmatprep.subr.mxu1 %v2498_v51  ;;  %v3313_v22 = vld [vmem:[#allocation85_spill] sm:$0xff]  ;;  %1087 = vmatpush1.msra.mxu0 %v2427_v41  ;;  %v957_v38 = vmul.f32 %v925_v5, %v2609_v27  ;;  %v922_v3 = vmul.f32 8.0, %v3315_v37  ;;  %v2735_v30 = vmul.f32 %v1022_v29, %v958_v48  ;;  %v3316_v5 = vld [vmem:[#allocation79_spill] sm:$0xff]  ;;  %v3317_v27 = vld [vmem:[#allocation78_spill] sm:$0xff] }
 0x126   : > { %1156 = vmatpush1.msra.mxu1 %v2472_v9  ;;  %v927_v14 = vmul.f32 8.0, %v3313_v22  ;;  %1088 = vmatprep.subr.mxu0 %v2407_v18  ;;  %v1021_v22 = vsub.f32 2.0, %v989_v11  ;;  %v1023_v7 = vsub.f32 2.0, %v991_v12  ;;  %v2740_v50 = vmul.f32 %v1024_v56, %v960_v6  ;;  %v3318_v12 = vld [vmem:[#allocation82_spill] sm:$0xff] }
 0x127   : > { %1157 = vmatprep.subr.mxu1 %v2449_v59  ;;  %1089 = vmatpush1.msra.mxu0 %v2387_v63  ;;  %v954_v35 = vmul.f32 %v922_v3, %v2589_v55  ;;  %v986_v37 = vmul.f32 3.0, %v3316_v5  ;;  %v924_v57 = vmul.f32 8.0, %v3317_v27  ;;  %v988_v29 = vmul.f32 3.0, %v3318_v12  ;;  %v3319_v11 = vld [vmem:[#allocation66_spill] sm:$0xff]  ;;  %v3320_v27 = vld [vmem:[#allocation71_spill] sm:$0xff] }
 0x128   : > { %1158 = vmatpush1.msra.mxu1 %v2430_v45  ;;  %v959_v28 = vmul.f32 %v927_v14, %v2617_v47  ;;  %1090 = vmatprep.subr.mxu0 %v2367_v52  ;;  %v2747_v48 = vmul.f32 %v1021_v22, %v957_v38  ;;  %v921_v47 = vmul.f32 8.0, %v3319_v11  ;;  %v985_v56 = vmul.f32 3.0, %v3320_v27  ;;  %v3321_v55 = vld [vmem:[#allocation70_spill] sm:$0xff]  ;;  %v3322_v22 = vld [vmem:[#allocation75_spill] sm:$0xff] }
 0x129   : > { %1159 = vmatprep.subr.mxu1 %v2410_v26  ;;  %1091 = vmatpush1.msra.mxu0 %v2347_v43  ;;  %v1018_v3 = vsub.f32 2.0, %v986_v37  ;;  %v956_v6 = vmul.f32 %v924_v57, %v2600_v8  ;;  %v923_v5 = vmul.f32 8.0, %v3321_v55  ;;  %v987_v11 = vmul.f32 3.0, %v3322_v22  ;;  %v3323_v37 = vld [vmem:[#allocation58_spill] sm:$0xff]  ;;  %v3324_v27 = vld [vmem:[#allocation63_spill] sm:$0xff] }
 0x12a   : > { %1160 = vmatpush1.msra.mxu1 %v2390_v1  ;;  %v2749_v14 = vmul.f32 %v1023_v7, %v959_v28  ;;  %1092 = vmatprep.subr.mxu0 %v2327_v33  ;;  %v1057_v7 = vld [vmem:[%s3095_s3] sm:$0x7]  ;;  %v1020_v28 = vsub.f32 2.0, %v988_v29  ;;  %v953_v38 = vmul.f32 %v921_v47, %v2563_v23  ;;  %v918_v12 = vmul.f32 8.0, %v3323_v37  ;;  %v3325_v23 = vld [vmem:[#allocation62_spill] sm:$0xff] }
 0x12b   : > { %1161 = vmatprep.subr.mxu1 %v2370_v53  ;;  %1093 = vmatpush1.msra.mxu0 %v2307_v20  ;;  %v2768_v57 = vmul.f32 %v1018_v3, %v954_v35  ;;  %v1017_v55 = vsub.f32 2.0, %v985_v56  ;;  %v955_v8 = vmul.f32 %v923_v5, %v2576_v0  ;;  %v982_v33 = vmul.f32 3.0, %v3324_v27  ;;  %v3326_v3 = vld [vmem:[#allocation67_spill] sm:$0xff]  ;;  %v3327_v0 = vld [vmem:[#allocation53_spill] sm:$0xff] }
 0x12c   : > { %1162 = vmatpush1.msra.mxu1 %v2350_v44  ;;  %1224 = vmatprep.subr.mxu0 %v2646_v60  ;;  %v2774_v47 = vmul.f32 %v1020_v28, %v956_v6  ;;  %v1019_v29 = vsub.f32 2.0, %v987_v11  ;;  %v950_v37 = vmul.f32 %v918_v12, %v2537_v46  ;;  %v920_v22 = vmul.f32 8.0, %v3325_v23  ;;  %v3328_v23 = vld [vmem:[#allocation56_spill] sm:$0xff]  ;;  %v3335_v46 = vld [vmem:[#allocation51_spill] sm:$0xff] }
 0x12d   : > { %1163 = vmatprep.subr.mxu1 %v2330_v34  ;;  %1855 = vmatmul.mubr.msk.f32.vlgmr.msra.gmra.mxu0 %vm1058_vm2, %v1057_v7  ;;  %v2780_v35 = vmul.f32 %v1017_v55, %v953_v38  ;;  %v1014_v5 = vsub.f32 2.0, %v982_v33  ;;  %v984_v56 = vmul.f32 3.0, %v3326_v3  ;;  %v917_v27 = vmul.f32 8.0, %v3327_v0  ;;  %v3330_v38 = vld [vmem:[#allocation94_spill] sm:$0xff] }
 0x12e   : > { %1164 = vmatpush1.msra.mxu1 %v2310_v21  ;;  %1225 = vmatpush1.msra.mxu0 %v2626_v2  ;;  %v2786_v60 = vmul.f32 %v1019_v29, %v955_v8  ;;  %v952_v12 = vmul.f32 %v920_v22, %v2550_v61  ;;  %v981_v6 = vmul.f32 3.0, %v3328_v23  ;;  %v3332_v2 = vld [vmem:[#allocation97_spill] sm:$0xff]  ;;  %v3333_v8 = vld [vmem:[#allocation88_spill] sm:$0xff]  ;;  %v3336_v23 = vld [vmem:[#allocation91_spill] sm:$0xff] }
 0x12f   : > { %1295 = vmatprep.subr.mxu1 %v2654_v19  ;;  %1856 = vmatmul.mubr.msk.f32.vlgmr.msra.gmra.mxu1 %vm1058_vm2, %v1057_v7  ;;  %v3329_v19 = vld [vmem:[#allocation55_spill] sm:$0xff]  ;;  %v2793_v33 = vmul.f32 %v1014_v5, %v950_v37  ;;  %v1016_v11 = vsub.f32 2.0, %v984_v56  ;;  %v949_v0 = vmul.f32 %v917_v27, %v2511_v17  ;;  %v3334_v61 = vld [vmem:[#allocation48_spill] sm:$0xff]  ;;  %v3337_v37 = vld [vmem:[#allocation81_spill] sm:$0xff] }
 0x130   : > { %v919_v28 = vmul.f32 8.0, %v3329_v19  ;;  %1296 = vmatpush1.msra.mxu1 %v2640_v62  ;;  %1226 = vmatprep.subr.mxu0 %v3330_v38  ;;  %v3331_v7 = vld [vmem:[#allocation59_spill] sm:$0xff]  ;;  %v1013_v22 = vsub.f32 2.0, %v981_v6  ;;  %v914_v19 = vmul.f32 8.0, %v3334_v61  ;;  %v978_v62 = vmul.f32 3.0, %v3335_v46  ;;  %v3338_v56 = vld [vmem:[#allocation50_spill] sm:$0xff] }
 0x131   : > { %v983_v55 = vmul.f32 3.0, %v3331_v7  ;;  %1297 = vmatprep.subr.mxu1 %v3332_v2  ;;  %1227 = vmatpush1.msra.mxu0 %v3333_v8  ;;  %v2804_v5 = vmul.f32 %v1016_v11, %v952_v12  ;;  %v916_v38 = vmul.f32 8.0, %v3338_v56  ;;  %v3339_v17 = vld [vmem:[#allocation54_spill] sm:$0xff]  ;;  %v3340_v7 = vld [vmem:[#allocation84_spill] sm:$0xff]  ;;  %v3341_v6 = vld [vmem:[#allocation73_spill] sm:$0xff] }
 0x132   : > { %v951_v29 = vmul.f32 %v919_v28, %v2524_v36  ;;  %1298 = vmatpush1.msra.mxu1 %v3336_v23  ;;  %1228 = vmatprep.subr.mxu0 %v3337_v37  ;;  %v980_v2 = vmul.f32 3.0, %v3339_v17  ;;  %v2810_v28 = vmul.f32 %v1013_v22, %v949_v0  ;;  %v946_v61 = vmul.f32 %v914_v19, %v2485_v15  ;;  %v3342_v36 = vld [vmem:[#allocation42_spill] sm:$0xff]  ;;  %v3343_v46 = vld [vmem:[#allocation77_spill] sm:$0xff]  ;;  %v3345_v56 = vld [vmem:[#allocation47_spill] sm:$0xff] }
 0x133   : > { %v1015_v27 = vsub.f32 2.0, %v983_v55  ;;  %1299 = vmatprep.subr.mxu1 %v3340_v7  ;;  %1229 = vmatpush1.msra.mxu0 %v3341_v6  ;;  %v1010_v8 = vsub.f32 2.0, %v978_v62  ;;  %v913_v23 = vmul.f32 8.0, %v3342_v36  ;;  %v3344_v12 = vld [vmem:[#allocation65_spill] sm:$0xff]  ;;  %v948_v55 = vmul.f32 %v916_v38, %v2498_v51  ;;  %v3348_v36 = vld [vmem:[#allocation46_spill] sm:$0xff] }
 0x134   : > { %1300 = vmatpush1.msra.mxu1 %v3343_v46  ;;  %1230 = vmatprep.subr.mxu0 %v3344_v12  ;;  %v1012_v37 = vsub.f32 2.0, %v980_v2  ;;  %v977_v7 = vmul.f32 3.0, %v3345_v56  ;;  %v3346_v17 = vld [vmem:[#allocation69_spill] sm:$0xff]  ;;  %v915_v62 = vmul.f32 8.0, %v3348_v36 }
 0x135   : > { %v2816_v11 = vmul.f32 %v1015_v27, %v951_v29  ;;  %1301 = vmatprep.subr.mxu1 %v3346_v17  ;;  %v3347_v0 = vld [vmem:[#allocation57_spill] sm:$0xff]  ;;  %v2822_v22 = vmul.f32 %v1010_v8, %v946_v61  ;;  %v945_v19 = vmul.f32 %v913_v23, %v2459_v13  ;;  %v3354_v23 = vld [vmem:[#allocation40_spill] sm:$0xff]  ;;  %v3355_v13 = vld [vmem:[#allocation43_spill] sm:$0xff] }
 0x136   : > { %1231 = vmatpush1.msra.mxu0 %v3347_v0  ;;  %v3349_v46 = vld [vmem:[#allocation49_spill] sm:$0xff]  ;;  %v2829_v29 = vmul.f32 %v1012_v37, %v948_v55  ;;  %v1009_v27 = vsub.f32 2.0, %v977_v7  ;;  %v3353_v0 = vld [vmem:[#allocation99_spill] sm:$0xff]  ;;  %v947_v61 = vmul.f32 %v915_v62, %v2472_v9  ;;  %v912_v36 = vmul.f32 8.0, %v3354_v23  ;;  %v3356_v7 = vld [vmem:[#allocation32_spill] sm:$0xff] }
 0x137   : > { %v979_v6 = vmul.f32 3.0, %v3349_v46  ;;  %v3350_v12 = vld [vmem:[#allocation61_spill] sm:$0xff]  ;;  %1232 = vmatprep.subr.mxu0 %v2630_v31 }
 0x138   : > { %1302 = vmatpush1.msra.mxu1 %v3350_v12  ;;  %v3351_v38 = vld [vmem:[#allocation37_spill] sm:$0xff]  ;;  %1233 = vmatpush1.msra.mxu0 %v2657_v25  ;;  %v976_v12 = vmul.f32 3.0, %v3355_v13  ;;  %v2840_v31 = vmul.f32 %v1009_v27, %v945_v19  ;;  %v944_v62 = vmul.f32 %v912_v36, %v2449_v59  ;;  %v3358_v19 = vld [vmem:[#allocation35_spill] sm:$0xff] }
 0x139   : > { %v910_v2 = vmul.f32 8.0, %v3351_v38  ;;  %v3352_v17 = vld [vmem:[#allocation41_spill] sm:$0xff]  ;;  %1303 = vmatprep.subr.mxu1 %v3353_v0  ;;  %v1011_v8 = vsub.f32 2.0, %v979_v6  ;;  %1234 = vmatprep.subr.mxu0 %v2666_v39  ;;  %v909_v38 = vmul.f32 8.0, %v3356_v7  ;;  %v3357_v0 = vld [vmem:[#allocation36_spill] sm:$0xff]  ;;  %v911_v27 = vmul.f32 8.0, %v3358_v19 }
 0x13a   : > { %v974_v51 = vmul.f32 3.0, %v3352_v17  ;;  %1304 = vmatpush1.msra.mxu1 %v2660_v58  ;;  %1235 = vmatpush1.msra.mxu0 %v2672_v32  ;;  %v1008_v6 = vsub.f32 2.0, %v976_v12  ;;  %v973_v58 = vmul.f32 3.0, %v3357_v0 }
 0x13b   : > { %v942_v55 = vmul.f32 %v910_v2, %v2439_v49  ;;  %1305 = vmatprep.subr.mxu1 %v2669_v54  ;;  %v2846_v25 = vmul.f32 %v1011_v8, %v947_v61  ;;  %1236 = vmatprep.subr.mxu0 %v2686_v4  ;;  %v3359_v54 = vld [vmem:[#allocation38_spill] sm:$0xff]  ;;  %v3360_v8 = vld [vmem:[#allocation28_spill] sm:$0xff]  ;;  %v943_v12 = vmul.f32 %v911_v27, %v2430_v45  ;;  %v3369_v45 = vld [vmem:[#allocation27_spill] sm:$0xff] }
 0x13c   : > { %v1006_v37 = vsub.f32 2.0, %v974_v51  ;;  %1306 = vmatpush1.msra.mxu1 %v2678_v42  ;;  %v941_v51 = vmul.f32 %v909_v38, %v2427_v41  ;;  %v975_v2 = vmul.f32 3.0, %v3359_v54  ;;  %1237 = vmatpush1.msra.mxu0 %v2700_v16  ;;  %v2859_v32 = vmul.f32 %v1008_v6, %v944_v62  ;;  %v3361_v42 = vld [vmem:[#allocation31_spill] sm:$0xff]  ;;  %v1204_v4 = vld [vmem:[%s3096_s4] sm:$0x7]  ;;  %v3364_v38 = vld [vmem:[#allocation102_spill] sm:$0xff] }
 0x13d   : > { %1307 = vmatprep.subr.mxu1 %v2697_v24  ;;  %v1005_v61 = vsub.f32 2.0, %v973_v58  ;;  %v906_v23 = vmul.f32 8.0, %v3360_v8  ;;  %v970_v36 = vmul.f32 3.0, %v3361_v42  ;;  %1238 = vmatprep.subr.mxu0 %v2708_v10  ;;  %v3365_v62 = vld [vmem:[#allocation101_spill] sm:$0xff]  ;;  %v3366_v58 = vld [vmem:[#allocation24_spill] sm:$0xff]  ;;  %v3367_v8 = vmov 0.0  }
 0x13e   : > { %v2852_v39 = vmul.f32 %v1006_v37, %v942_v55  ;;  %1308 = vmatpush1.msra.mxu1 %v2703_v40  ;;  %v1007_v24 = vsub.f32 2.0, %v975_v2  ;;  %v3362_v55 = vld [vmem:[#allocation30_spill] sm:$0xff]  ;;  %v3363_v37 = vld [vmem:[#allocation33_spill] sm:$0xff]  ;;  %1239 = vmatpush1.msra.mxu0 %v3365_v62  ;;  %v905_v19 = vmul.f32 8.0, %v3366_v58  ;;  %v3368_v41 = vld [vmem:[#allocation103_spill] sm:$0xff] }
 0x13f   : > { %v908_v16 = vmul.f32 8.0, %v3362_v55  ;;  %v972_v7 = vmul.f32 3.0, %v3363_v37  ;;  %1309 = vmatprep.subr.mxu1 %v3364_v38  ;;  %v2873_v6 = vmul.f32 %v1005_v61, %v941_v51  ;;  %v938_v40 = vmul.f32 %v906_v23, %v2407_v18  ;;  %1272 = vmatprep.mubr.f32.mxu0 %v3367_v8  ;;  %v3370_v23 = vld [vmem:[#allocation26_spill] sm:$0xff]  ;;  %v3371_v62 = vld [vmem:[#allocation29_spill] sm:$0xff] }
 0x140   : > { %v1002_v10 = vsub.f32 2.0, %v970_v36  ;;  %1310 = vmatpush1.msra.mxu1 %v3368_v41  ;;  %v2879_v27 = vmul.f32 %v1007_v24, %v943_v12  ;;  %v969_v38 = vmul.f32 3.0, %v3369_v45  ;;  %1343 = vmatprep.mubr.f32.mxu1 %v3367_v8  ;;  %v937_v61 = vmul.f32 %v905_v19, %v2387_v63  ;;  %v3372_v24 = vld [vmem:[#allocation19_spill] sm:$0xff]  ;;  %v3374_v19 = vld [vmem:[#allocation22_spill] sm:$0xff]  ;;  %v3375_v63 = vld [vmem:[#allocation25_spill] sm:$0xff] }
 0x141   : > { %v940_v2 = vmul.f32 %v908_v16, %v2410_v26  ;;  %v1004_v55 = vsub.f32 2.0, %v972_v7  ;;  %1857 = vmatmul.mubr.msk.f32.vlgmr.msra.gmra.mxu0 %vm1058_vm2, %v1204_v4  ;;  %v907_v36 = vmul.f32 8.0, %v3370_v23  ;;  %v971_v58 = vmul.f32 3.0, %v3371_v62  ;;  %1858 = vmatmul.mubr.msk.f32.vlgmr.msra.gmra.mxu1 %vm1058_vm2, %v1204_v4  ;;  %v3373_v7 = vld [vmem:[#allocation23_spill] sm:$0xff] }
 0x142   : > { %v2885_v51 = vmul.f32 %v1002_v10, %v938_v40  ;;  %1371 = vmatprep.subr.mxu0 %v2735_v30  ;;  %v1001_v12 = vsub.f32 2.0, %v969_v38  ;;  %v902_v16 = vmul.f32 8.0, %v3372_v24  ;;  %v966_v26 = vmul.f32 3.0, %v3373_v7  ;;  %1442 = vmatprep.subr.mxu1 %v2740_v50  ;;  %v3376_v38 = vld [vmem:[#allocation15_spill] sm:$0xff] }
 0x143   : > { %v2892_v41 = vmul.f32 %v1004_v55, %v940_v2  ;;  %1372 = vmatpush1.msra.mxu0 %v2747_v48  ;;  %v939_v40 = vmul.f32 %v907_v36, %v2390_v1  ;;  %v1003_v10 = vsub.f32 2.0, %v971_v58  ;;  %v904_v23 = vmul.f32 8.0, %v3374_v19  ;;  %1443 = vmatpush1.msra.mxu1 %v2749_v14  ;;  %v3377_v58 = vld [vmem:[#allocation18_spill] sm:$0xff] }
 0x144   : > { %v968_v4 = vmul.f32 3.0, %v3375_v63  ;;  %1373 = vmatprep.subr.mxu0 %v2768_v57  ;;  %v1033_v30 = vmul.f32 %v1001_v12, %v937_v61  ;;  %v934_v2 = vmul.f32 %v902_v16, %v2367_v52  ;;  %v998_v55 = vsub.f32 2.0, %v966_v26  ;;  %1444 = vmatprep.subr.mxu1 %v2774_v47  ;;  %v3378_v26 = vld [vmem:[#allocation17_spill] sm:$0xff]  ;;  %v3379_v12 = vld [vmem:[#allocation20_spill] sm:$0xff] }
 0x145   : > { %v901_v24 = vmul.f32 8.0, %v3376_v38  ;;  %1374 = vmatpush1.msra.mxu0 %v2780_v35  ;;  %v1035_v50 = vmul.f32 %v1003_v10, %v939_v40  ;;  %v936_v48 = vmul.f32 %v904_v23, %v2370_v53  ;;  %v965_v19 = vmul.f32 3.0, %v3377_v58  ;;  %1445 = vmatpush1.msra.mxu1 %v2786_v60  ;;  %v3380_v40 = vld [vmem:[#allocation11_spill] sm:$0xff]  ;;  %v3381_v23 = vld [vmem:[#allocation14_spill] sm:$0xff]  ;;  %v3383_v38 = vld [vmem:[#allocation16_spill] sm:$0xff] }
 0x146   : > { %v1000_v36 = vsub.f32 2.0, %v968_v4  ;;  %1375 = vmatprep.subr.mxu0 %v2793_v33  ;;  %v1030_v14 = vmul.f32 %v998_v55, %v934_v2  ;;  %v903_v61 = vmul.f32 8.0, %v3378_v26  ;;  %v967_v16 = vmul.f32 3.0, %v3379_v12  ;;  %1446 = vmatprep.subr.mxu1 %v2804_v5  ;;  %v3382_v2 = vld [vmem:[#allocation13_spill] sm:$0xff] }
 0x147   : > { %v933_v57 = vmul.f32 %v901_v24, %v2347_v43  ;;  %1376 = vmatpush1.msra.mxu0 %v2810_v28  ;;  %v997_v35 = vsub.f32 2.0, %v965_v19  ;;  %v898_v10 = vmul.f32 8.0, %v3380_v40  ;;  %v962_v4 = vmul.f32 3.0, %v3381_v23  ;;  %1447 = vmatpush1.msra.mxu1 %v2816_v11  ;;  %v3384_v28 = vld [vmem:[#allocation21_spill] sm:$0xff]  ;;  %v3385_v19 = vld [vmem:[#allocation8_spill] sm:$0xff] }
 0x148   : > { %v1032_v47 = vmul.f32 %v1000_v36, %v936_v48  ;;  %1377 = vmatprep.subr.mxu0 %v2822_v22  ;;  %v935_v60 = vmul.f32 %v903_v61, %v2350_v44  ;;  %v999_v33 = vsub.f32 2.0, %v967_v16  ;;  %v900_v55 = vmul.f32 8.0, %v3382_v2  ;;  %1448 = vmatprep.subr.mxu1 %v2829_v29  ;;  %v3386_v16 = vld [vmem:[#allocation10_spill] sm:$0xff]  ;;  %v3390_v2 = vld [vmem:[#allocation95_spill] sm:$0xff] }
 0x149   : > { %v964_v24 = vmul.f32 3.0, %v3383_v38  ;;  %1378 = vmatpush1.msra.mxu0 %v2840_v31  ;;  %v1029_v5 = vmul.f32 %v997_v35, %v933_v57  ;;  %v930_v48 = vmul.f32 %v898_v10, %v3384_v28  ;;  %v994_v36 = vsub.f32 2.0, %v962_v4  ;;  %1449 = vmatpush1.msra.mxu1 %v2846_v25  ;;  %v3387_v57 = vld [vmem:[#allocation9_spill] sm:$0xff]  ;;  %v3388_v10 = vld [vmem:[#allocation12_spill] sm:$0xff] }
 0x14a   : > { %v897_v26 = vmul.f32 8.0, %v3385_v19  ;;  %1379 = vmatprep.subr.mxu0 %v2852_v39  ;;  %v1031_v11 = vmul.f32 %v999_v33, %v935_v60  ;;  %v932_v22 = vmul.f32 %v900_v55, %v2330_v34  ;;  %v961_v40 = vmul.f32 3.0, %v3386_v16  ;;  %1450 = vmatprep.subr.mxu1 %v2859_v32  ;;  %v3389_v60 = vld [vmem:[#allocation92_spill] sm:$0xff] }
 0x14b   : > { %v996_v61 = vsub.f32 2.0, %v964_v24  ;;  %1380 = vmatpush1.msra.mxu0 %v2873_v6  ;;  %v1026_v29 = vmul.f32 %v994_v36, %v930_v48  ;;  %v899_v35 = vmul.f32 8.0, %v3387_v57  ;;  %v963_v4 = vmul.f32 3.0, %v3388_v10  ;;  %1451 = vmatpush1.msra.mxu1 %v2879_v27  ;;  %v3391_v24 = vld [vmem:[#allocation86_spill] sm:$0xff]  ;;  %v3392_v36 = vld [vmem:[#allocation89_spill] sm:$0xff] }
 0x14c   : > { %v929_v31 = vmul.f32 %v897_v26, %v2307_v20  ;;  %1381 = vmatprep.subr.mxu0 %v2885_v51  ;;  %v993_v39 = vsub.f32 2.0, %v961_v40  ;;  %v830_v33 = vmul.f32 6.0, %v3389_v60  ;;  %v832_v55 = vmul.f32 6.0, %v3390_v2  ;;  %1452 = vmatprep.subr.mxu1 %v2892_v41  ;;  %v3396_v2 = vld [vmem:[#allocation100_spill] sm:$0xff] }
 0x14d   : > { %v1028_v25 = vmul.f32 %v996_v61, %v932_v22  ;;  %1382 = vmatpush1.msra.mxu0 %v1033_v30  ;;  %v931_v32 = vmul.f32 %v899_v35, %v2310_v21  ;;  %v995_v6 = vsub.f32 2.0, %v963_v4  ;;  %v829_v48 = vmul.f32 6.0, %v3391_v24  ;;  %1453 = vmatpush1.msra.mxu1 %v1035_v50  ;;  %v3393_v22 = vld [vmem:[#allocation79_spill] sm:$0xff]  ;;  %v3394_v30 = vld [vmem:[#allocation82_spill] sm:$0xff] }
 0x14e   : > { %v831_v19 = vmul.f32 6.0, %v3392_v36  ;;  %1383 = vmatprep.subr.mxu0 %v1030_v14  ;;  %v1025_v27 = vmul.f32 %v993_v39, %v929_v31  ;;  %v1852_v51 = vadd.f32 -2.0, %v830_v33  ;;  %v1854_v26 = vadd.f32 -2.0, %v832_v55  ;;  %1454 = vmatprep.subr.mxu1 %v1032_v47  ;;  %v3395_v35 = vld [vmem:[#allocation98_spill] sm:$0xff]  ;;  %v3397_v14 = vld [vmem:[#allocation71_spill] sm:$0xff]  ;;  %v3399_v33 = vld [vmem:[#allocation96_spill] sm:$0xff] }
 0x14f   : > { %v826_v61 = vmul.f32 6.0, %v3393_v22  ;;  %1384 = vmatpush1.msra.mxu0 %v1029_v5  ;;  %v1027_v40 = vmul.f32 %v995_v6, %v931_v32  ;;  %v1851_v57 = vadd.f32 -2.0, %v829_v48  ;;  %v828_v60 = vmul.f32 6.0, %v3394_v30  ;;  %1455 = vmatpush1.msra.mxu1 %v1031_v11  ;;  %v1351_v47 = vld [vmem:[%s3098_s6] sm:$0x7]  ;;  %v3398_v5 = vld [vmem:[#allocation93_spill] sm:$0xff] }
 0x150   : > { %v1853_v41 = vadd.f32 -2.0, %v831_v19  ;;  %1385 = vmatprep.subr.mxu0 %v1026_v29  ;;  %v894_v4 = vmul.f32 %v1852_v51, %v3395_v35  ;;  %v896_v24 = vmul.f32 %v1854_v26, %v3396_v2  ;;  %v825_v31 = vmul.f32 6.0, %v3397_v14  ;;  %1456 = vmatprep.subr.mxu1 %v1028_v25  ;;  %v3400_v11 = vld [vmem:[#allocation75_spill] sm:$0xff]  ;;  %v3403_v51 = vld [vmem:[#allocation90_spill] sm:$0xff] }
 0x151   : > { %v1848_v50 = vadd.f32 -2.0, %v826_v61  ;;  %1386 = vmatpush1.msra.mxu0 %v1025_v27  ;;  %v893_v39 = vmul.f32 %v1851_v57, %v3398_v5  ;;  %v1850_v32 = vadd.f32 -2.0, %v828_v60  ;;  %v827_v29 = vmul.f32 6.0, %v3400_v11  ;;  %1457 = vmatpush1.msra.mxu1 %v1027_v40  ;;  %v3401_v6 = vld [vmem:[#allocation87_spill] sm:$0xff]  ;;  %v3404_v61 = vld [vmem:[#allocation56_spill] sm:$0xff] }
 0x152   : > { %v895_v55 = vmul.f32 %v1853_v41, %v3399_v33  ;;  %1419 = vmatprep.mubr.f32.mxu0 %v3367_v8  ;;  %v1847_v36 = vadd.f32 -2.0, %v825_v31  ;;  %v3402_v19 = vld [vmem:[#allocation63_spill] sm:$0xff]  ;;  %v824_v27 = vmul.f32 6.0, %v3326_v3  ;;  %1490 = vmatprep.mubr.f32.mxu1 %v3367_v8  ;;  %v821_v57 = vmul.f32 6.0, %v3404_v61  ;;  %v3406_v40 = vld [vmem:[#allocation80_spill] sm:$0xff]  ;;  %v3409_v33 = vld [vmem:[#allocation54_spill] sm:$0xff] }
 0x153   : > { %v890_v48 = vmul.f32 %v1848_v50, %v3401_v6  ;;  %v822_v25 = vmul.f32 6.0, %v3402_v19  ;;  %1530 = vmatprep.subr.mxu0 %v894_v4  ;;  %v892_v26 = vmul.f32 %v1850_v32, %v3403_v51  ;;  %v1849_v22 = vadd.f32 -2.0, %v827_v29  ;;  %v3405_v41 = vld [vmem:[#allocation59_spill] sm:$0xff]  ;;  %1601 = vmatprep.subr.mxu1 %v896_v24  ;;  %v3410_v24 = vld [vmem:[#allocation72_spill] sm:$0xff] }
 0x154   : > { %v823_v30 = vmul.f32 6.0, %v3405_v41  ;;  %1859 = vmatmul.mubr.msk.f32.vlgmr.msra.gmra.mxu0 %vm1058_vm2, %v1351_v47  ;;  %v889_v60 = vmul.f32 %v1847_v36, %v3406_v40  ;;  %v1846_v2 = vadd.f32 -2.0, %v824_v27  ;;  %v3407_v50 = vld [vmem:[#allocation51_spill] sm:$0xff]  ;;  %1860 = vmatmul.mubr.msk.f32.vlgmr.msra.gmra.mxu1 %vm1058_vm2, %v1351_v47  ;;  %v1843_v31 = vadd.f32 -2.0, %v821_v57  ;;  %v3411_v29 = vld [vmem:[#allocation76_spill] sm:$0xff] }
 0x155   : > { %v1844_v35 = vadd.f32 -2.0, %v822_v25  ;;  %v818_v14 = vmul.f32 6.0, %v3407_v50  ;;  %1531 = vmatpush1.msra.mxu0 %v893_v39  ;;  %v3408_v3 = vld [vmem:[#allocation83_spill] sm:$0xff]  ;;  %v820_v32 = vmul.f32 6.0, %v3409_v33  ;;  %1602 = vmatpush1.msra.mxu1 %v895_v55  ;;  %v817_v19 = vmul.f32 6.0, %v3345_v56  ;;  %v3412_v25 = vld [vmem:[#allocation64_spill] sm:$0xff] }
 0x156   : > { %v891_v4 = vmul.f32 %v1849_v22, %v3408_v3  ;;  %v1845_v5 = vadd.f32 -2.0, %v823_v30  ;;  %1532 = vmatprep.subr.mxu0 %v890_v48  ;;  %v888_v6 = vmul.f32 %v1846_v2, %v3411_v29  ;;  %1603 = vmatprep.subr.mxu1 %v892_v26  ;;  %v885_v47 = vmul.f32 %v1843_v31, %v3412_v25  ;;  %v3413_v39 = vld [vmem:[#allocation68_spill] sm:$0xff] }
 0x157   : > { %v886_v11 = vmul.f32 %v1844_v35, %v3410_v24  ;;  %v1840_v36 = vadd.f32 -2.0, %v818_v14  ;;  %1533 = vmatpush1.msra.mxu0 %v889_v60  ;;  %v1842_v51 = vadd.f32 -2.0, %v820_v32  ;;  %v819_v22 = vmul.f32 6.0, %v3349_v46  ;;  %v3414_v56 = vld [vmem:[#allocation60_spill] sm:$0xff]  ;;  %1578 = vmatprep.mubr.f32.mxu0 %v3367_v8 }
 0x158   : > { %v887_v27 = vmul.f32 %v1845_v5, %v3413_v39  ;;  %1604 = vmatpush1.msra.mxu1 %v891_v4  ;;  %v1839_v48 = vadd.f32 -2.0, %v817_v19  ;;  %v814_v61 = vmul.f32 6.0, %v3352_v17  ;;  %v816_v57 = vmul.f32 6.0, %v3355_v13  ;;  %v3415_v46 = vld [vmem:[#allocation52_spill] sm:$0xff]  ;;  %1649 = vmatprep.mubr.f32.mxu1 %v3367_v8 }
 0x159   : > { %1534 = vmatprep.subr.mxu0 %v886_v11  ;;  %v882_v55 = vmul.f32 %v1840_v36, %v2485_v15  ;;  %1605 = vmatprep.subr.mxu1 %v888_v6  ;;  %v884_v26 = vmul.f32 %v1842_v51, %v3414_v56  ;;  %v1841_v41 = vadd.f32 -2.0, %v819_v22  ;;  %v813_v30 = vmul.f32 6.0, %v3357_v0 }
 0x15a   : > { %1535 = vmatpush1.msra.mxu0 %v885_v47  ;;  %v815_v40 = vmul.f32 6.0, %v3359_v54  ;;  %1606 = vmatpush1.msra.mxu1 %v887_v27  ;;  %v881_v60 = vmul.f32 %v1839_v48, %v3415_v46  ;;  %v1836_v35 = vadd.f32 -2.0, %v814_v61  ;;  %v1838_v15 = vadd.f32 -2.0, %v816_v57 }
 0x15b   : > { %1536 = vmatprep.subr.mxu0 %v882_v55  ;;  %v810_v2 = vmul.f32 6.0, %v3361_v42  ;;  %1607 = vmatprep.subr.mxu1 %v884_v26  ;;  %v883_v13 = vmul.f32 %v1841_v41, %v2472_v9  ;;  %v1835_v17 = vadd.f32 -2.0, %v813_v30  ;;  %v812_v14 = vmul.f32 6.0, %v3363_v37  ;;  %v3416_v42 = vld [vmem:[#allocation44_spill] sm:$0xff]  ;;  %v3417_v9 = vld [vmem:[#allocation45_spill] sm:$0xff] }
 0x15c   : > { %v1837_v50 = vadd.f32 -2.0, %v815_v40  ;;  %1537 = vmatpush1.msra.mxu0 %v881_v60  ;;  %v878_v0 = vmul.f32 %v1836_v35, %v2439_v49  ;;  %v880_v54 = vmul.f32 %v1838_v15, %v2449_v59  ;;  %v809_v4 = vmul.f32 6.0, %v3369_v45  ;;  %v3418_v45 = vld [vmem:[#allocation39_spill] sm:$0xff] }
 0x15d   : > { %v1832_v3 = vadd.f32 -2.0, %v810_v2  ;;  %1608 = vmatpush1.msra.mxu1 %v883_v13  ;;  %v877_v31 = vmul.f32 %v1835_v17, %v3416_v42  ;;  %v1834_v33 = vadd.f32 -2.0, %v812_v14  ;;  %v811_v37 = vmul.f32 6.0, %v3371_v62  ;;  %v3419_v62 = vld [vmem:[#allocation34_spill] sm:$0xff] }
 0x15e   : > { %v879_v5 = vmul.f32 %v1837_v50, %v3417_v9  ;;  %1538 = vmatprep.subr.mxu0 %v878_v0  ;;  %1609 = vmatprep.subr.mxu1 %v880_v54  ;;  %v1831_v49 = vadd.f32 -2.0, %v809_v4  ;;  %v806_v59 = vmul.f32 6.0, %v3373_v7  ;;  %v808_v24 = vmul.f32 6.0, %v3375_v63 }
 0x15f   : > { %v874_v32 = vmul.f32 %v1832_v3, %v2407_v18  ;;  %1539 = vmatpush1.msra.mxu0 %v877_v31  ;;  %v876_v8 = vmul.f32 %v1834_v33, %v3418_v45  ;;  %v1833_v11 = vadd.f32 -2.0, %v811_v37  ;;  %v805_v29 = vmul.f32 6.0, %v3377_v58 }
 0x160   : > { %1610 = vmatpush1.msra.mxu1 %v879_v5  ;;  %v807_v6 = vmul.f32 6.0, %v3379_v12  ;;  %v873_v36 = vmul.f32 %v1831_v49, %v3419_v62  ;;  %v1828_v19 = vadd.f32 -2.0, %v806_v59  ;;  %v1830_v25 = vadd.f32 -2.0, %v808_v24 }
 0x161   : > { %1540 = vmatprep.subr.mxu0 %v874_v32  ;;  %v802_v18 = vmul.f32 6.0, %v3381_v23  ;;  %1611 = vmatprep.subr.mxu1 %v876_v8  ;;  %v875_v7 = vmul.f32 %v1833_v11, %v2390_v1  ;;  %v1827_v63 = vadd.f32 -2.0, %v805_v29  ;;  %v804_v39 = vmul.f32 6.0, %v3383_v38 }
 0x162   : > { %v1829_v47 = vadd.f32 -2.0, %v807_v6  ;;  %1541 = vmatpush1.msra.mxu0 %v873_v36  ;;  %v870_v27 = vmul.f32 %v1828_v19, %v2367_v52  ;;  %v872_v58 = vmul.f32 %v1830_v25, %v2370_v53  ;;  %v801_v51 = vmul.f32 6.0, %v3386_v16 }
 0x163   : > { %v1824_v12 = vadd.f32 -2.0, %v802_v18  ;;  %1612 = vmatpush1.msra.mxu1 %v875_v7  ;;  %v869_v22 = vmul.f32 %v1827_v63, %v2347_v43  ;;  %v1826_v55 = vadd.f32 -2.0, %v804_v39  ;;  %v803_v1 = vmul.f32 6.0, %v3388_v10 }
 0x164   : > { %v871_v23 = vmul.f32 %v1829_v47, %v2350_v44  ;;  %1542 = vmatprep.subr.mxu0 %v870_v27  ;;  %1613 = vmatprep.subr.mxu1 %v872_v58  ;;  %v1823_v48 = vadd.f32 -2.0, %v801_v51  ;;  %v1350_v44 = vld [vmem:[%s3097_s5] sm:$0x7] }
 0x165   : > { %v866_v38 = vmul.f32 %v1824_v12, %v3384_v28  ;;  %1543 = vmatpush1.msra.mxu0 %v869_v22  ;;  %v868_v52 = vmul.f32 %v1826_v55, %v2330_v34  ;;  %v1825_v53 = vadd.f32 -2.0, %v803_v1 }
 0x166   : > { %1614 = vmatpush1.msra.mxu1 %v871_v23  ;;  %v865_v43 = vmul.f32 %v1823_v48, %v2307_v20 }
 0x167   : > { %1544 = vmatprep.subr.mxu0 %v866_v38  ;;  %1615 = vmatprep.subr.mxu1 %v868_v52  ;;  %v867_v16 = vmul.f32 %v1825_v53, %v2310_v21 }
 0x168   : > { %1545 = vmatpush1.msra.mxu0 %v865_v43 }
 0x169   : > { %1616 = vmatpush1.msra.mxu1 %v867_v16  ;;  %1861 = vmatmul.mubr.msk.f32.vlgmr.msra.gmra.mxu0 %vm1058_vm2, %v1350_v44 }
 0x16a   : > { %1862 = vmatmul.mubr.msk.f32.vlgmr.msra.gmra.mxu1 %vm1058_vm2, %v1350_v44 }
 0x1ed   : > { %v1128_v20 = vpop.f32.mrf.mxu0 }
 0x1ef   : > { %v1199_v34 = vpop.f32.mrf.mxu1  ;;  %v1130_v21 = vpop.f32.mrf.mxu0 }
 0x1f0   : > { %v1501_v28 = vcombine.low %v1128_v20, %v1130_v21 }
 0x1f1   : > { %v1201_v10 = vpop.f32.mrf.mxu1 }
 0x1f2   : > { %v1502_v61 = vcombine.low %v1199_v34, %v1201_v10  ;;  %1505 = vst [vmem:[%s303_s26] sm:$0x77] %v1501_v28 }
 0x1f4   : > { %1506 = vst [vmem:[%s303_s26 + $0x8] sm:$0x77] %v1502_v61 }
 0x1f5   : > { %2000 = shalt.err (!%p1997_p3)
}
 0x1f6   : > { %s2001_s26 = scalar_lea.hbm %s3030_s17, 256  ;;  %s2005_s20 = scalar_lea.hbm %s3099_s7, 1024 }
 0x1f7   : > { %p2002_p4 = scmp.ne.s32.totalorder %s3030_s17, %s2001_s26  ;;  %p2006_p9 = scmp.lt.s32.totalorder %s3030_s17, %s3099_s7 }
 0x1f8   : > { %p2007_p10 = scmp.lt.s32.totalorder %s2005_s20, %s2001_s26 }
 0x1f9   : > { %p2003_p7 = pnand %p2002_p4, %p2166_p5 }
 0x1fa   : > { %p2008_p11 = por %p2007_p10, %p2006_p9 }
 0x1fb   : > { %p2004_p8 = pneg %p2003_p7 }
 0x1fd   : > { %p2009_p12 = pnand %p2008_p11, %p2004_p8 }
 0x1ff   : > { %2012 = shalt.err (!%p2009_p12)
}
 0x200   : > { %1873 = dma.vmem_to_hbm [thread:$0]  (%p2166_p5), %s1691_s10, 256, %s3030_s17, %s1671_s18  }
 0x201   : > { %v1274_v57 = vpop.f32.mrf.mxu0  ;;  %v1345_v56 = vpop.f32.mrf.mxu1  ;;  %s3420_s24 = sshll.u32 %s3019_s23, 4  ;;  %s3421_s17 = sshll.u32 %s2149_s9, 8 }
 0x202   : > { %v1507_v60 = vmul.f32 %v1274_v57, %v1128_v20  ;;  %v1509_v15 = vmul.f32 %v1345_v56, %v1199_v34  ;;  %s310_s25 = scalar_lea.vmem [#allocation4], %s3420_s24  ;;  %s3056_s21 = scalar_lea.hbm %s3100_s8, %s3421_s17 }
 0x203   : > { %v1276_v26 = vpop.f32.mrf.mxu0  ;;  %v1347_v41 = vpop.f32.mrf.mxu1  ;;  %s1704_s10 = sshll.u32 %s310_s25, 4  ;;  %s1676_s22 = scalar_lea.sflag [#allocation5], %s3019_s23  ;;  %s1705_s10 = int_to_ptr.vmem [resolvable:$true] %s1704_s10 }
 0x204   : > { %v1508_v13 = vmul.f32 %v1276_v26, %v1130_v21  ;;  %v1510_v14 = vmul.f32 %v1347_v41, %v1201_v10  ;;  %s2013_s26 = scalar_lea.vmem %s1705_s10, 256  ;;  %s2082_s12 = smov [#allocation4]  }
 0x205   : > { %p2014_p13 = scmp.ne.s32.totalorder %s1705_s10, %s2013_s26  ;;  %s2017_s13 = sshll.u32 %s2082_s12, 4  ;;  %s2018_s13 = int_to_ptr.vmem [resolvable:$false] %s2017_s13 }
 0x206   : > { %s2019_s20 = scalar_lea.vmem %s2018_s13, 512  ;;  %p2020_p2 = scmp.lt.s32.totalorder %s1705_s10, %s2018_s13 }
 0x207   : > { %p2015_p0 = pnand %p2014_p13, %p2166_p5  ;;  %p2021_p3 = scmp.lt.s32.totalorder %s2019_s20, %s2013_s26 }
 0x209   : > { %p2016_p1 = pneg %p2015_p0  ;;  %p2022_p4 = por %p2021_p3, %p2020_p2 }
 0x20b   : > { %p2023_p7 = pnand %p2022_p4, %p2016_p1 }
 0x214   : > { %v1421_v30 = vpop.f32.mrf.mxu0  ;;  %v1492_v40 = vpop.f32.mrf.mxu1 }
 0x216   : > { %v1423_v46 = vpop.f32.mrf.mxu0  ;;  %v1494_v35 = vpop.f32.mrf.mxu1 }
 0x229   : > { %v1580_v2 = vpop.f32.mrf.mxu0 }
 0x22a   : > { %v1581_v17 = vadd.f32 %v1580_v2, %v1507_v60  ;;  %v1651_v50 = vpop.f32.mrf.mxu1 }
 0x22b   : > { %v1652_v0 = vadd.f32 %v1651_v50, %v1509_v15  ;;  %v1582_v54 = vpop.f32.mrf.mxu0 }
 0x22c   : > { %v1583_v3 = vadd.f32 %v1582_v54, %v1508_v13  ;;  %v1653_v4 = vpop.f32.mrf.mxu1  ;;  %v1656_v31 = vsub.f32 %v1581_v17, %v1421_v30 }
 0x22d   : > { %v1654_v42 = vadd.f32 %v1653_v4, %v1510_v14  ;;  %v1658_v5 = vsub.f32 %v1652_v0, %v1492_v40 }
 0x22e   : > { %v1657_v9 = vsub.f32 %v1583_v3, %v1423_v46 }
 0x22f   : > { %v1659_v33 = vsub.f32 %v1654_v42, %v1494_v35 }
 0x230   : > { %v1664_v37 = vcombine.low %v1656_v31, %v1657_v9 }
 0x231   : > { %v1665_v32 = vcombine.low %v1658_v5, %v1659_v33 }
 0x232   : > { %1668 = vst [vmem:[%s310_s25] sm:$0x77] %v1664_v37 }
 0x233   : > { %1669 = vst [vmem:[%s310_s25 + $0x8] sm:$0x77] %v1665_v32 }
 0x234   : > { %2026 = shalt.err (!%p2023_p7)
}
 0x235   : > { %s2027_s9 = scalar_lea.hbm %s3056_s21, 256  ;;  %s2031_s25 = scalar_lea.hbm %s3100_s8, 1024 }
 0x236   : > { %p2028_p8 = scmp.ne.s32.totalorder %s3056_s21, %s2027_s9  ;;  %p2032_p11 = scmp.lt.s32.totalorder %s3056_s21, %s3100_s8 }
 0x237   : > { %p2033_p12 = scmp.lt.s32.totalorder %s2031_s25, %s2027_s9 }
 0x238   : > { %p2029_p9 = pnand %p2028_p8, %p2166_p5 }
 0x239   : > { %p2034_p13 = por %p2033_p12, %p2032_p11 }
 0x23a   : > { %p2030_p10 = pneg %p2029_p9 }
 0x23c   : > { %p2035_p0 = pnand %p2034_p13, %p2030_p10 }
 0x23e   : > { %2038 = shalt.err (!%p2035_p0)
}
 0x23f   : > { %1874 = dma.vmem_to_hbm [thread:$0]  (%p2166_p5), %s1705_s10, 256, %s3056_s21, %s1676_s22  }
 0x240 PF: > { %p1884_p1 = scmp.ge.s32.totalorder %s2077_s30, 2  ;;  %s1716_s19 = sand.u32 1, %s2065_s27  }
 0x241   : > { %s1717_s26 = scalar_lea.sflag [#allocation3], %s1716_s19 }
 0x242   : > { %p1878_p2 = pnand %p1884_p1, %p2170_p6 }
 0x244   : > { %p1879_p3 = pneg %p1878_p2 }
 0x246   : > { %2056 = dma.done.wait (%p1879_p3), %s1717_s26, 256  }
 0x247   : > { %2058 = vsyncadd (%p1879_p3), %s1717_s26, 4294967040  ;;  %s1726_s12 = scalar_lea.sflag [#allocation5], %s1716_s19 }
 0x248   : > { %2060 = dma.done.wait (%p1879_p3), %s1726_s12, 256  }
 0x249   : > { %2062 = vsyncadd (%p1879_p3), %s1726_s12, 4294967040  ;;  %p22_p5 = scmp.ge.s32.totalorder %s2153_s11, 6   ;;  %s3422_s27 = smov %s2069_s28 }
 0x24a   : > { %s3423_s28 = smov %s2073_s29  ;;  %s3424_s29 = smov %s2164_s14 }
 0x24b   : > { %s3425_s30 = smov %s2153_s11  ;;  %24 = sbr.rel (!%p22_p5) target bundleno = 5 (0x5), region = 100 }
 0x250   :  { %1731 = vsyncpa [#allocation3], 1 }
 0x251   :  { %1733 = vsyncpa [#allocation3 + $0x1], 1 }
 0x252   :  { %1734 = vsyncpa [#allocation5], 1 }
 0x253   :  { %1736 = vsyncpa [#allocation5 + $0x1], 1 }

</bundles_post_ra>
